<compile_context>
chip_gen: v5e
topology: v5e:2x2
jax: 0.10.0
libtpu: 0.0.40
codegen_flags: <defaults>
</compile_context>

<pallas_src>
import math
import jax
import jax.numpy as jnp
from jax.experimental import pallas as pl
from jax.experimental.pallas import tpu as pltpu


# ----------------------------- LSTM kernel ---------------------------------
def _lstm_kernel(x_ref, wih_ref, whh_ref, b_ref, out_ref, xg_sc, h_sc, c_sc):
    # x_ref:   (S, F)    row T-1 of the original (S, T, F) input (sliced in the
    #                    wrapper -> no T-fold over-fetch, no in-kernel gather).
    # wih_ref: (F, 4Hp)  bf16   whh_ref: (Hp, 4Hp) bf16   b_ref: (1, 4Hp) f32
    #          gate order (i, f, g, o), each gate zero-padded H -> Hp lanes.
    # out_ref: (S, Hp)   hidden state of LSTM-batch row T-1 at every seq step.
    # xg_sc:   (S, 4Hp)  hoisted input projection; h_sc / c_sc: (1, Hp) state.
    S = x_ref.shape[0]
    Hp = h_sc.shape[-1]

    # Hoisted input projection: one MXU call for the whole sequence (+ biases).
    xg_sc[...] = (
        jnp.dot(x_ref[...].astype(jnp.bfloat16), wih_ref[...],
                preferred_element_type=jnp.float32)
        + b_ref[...]
    )
    h_sc[...] = jnp.zeros_like(h_sc)
    c_sc[...] = jnp.zeros_like(c_sc)

    def step(t, carry):
        gates = xg_sc[pl.ds(t, 1), :] + jnp.dot(
            h_sc[...].astype(jnp.bfloat16), whh_ref[...],
            preferred_element_type=jnp.float32)               # (1, 4Hp)
        i = jax.nn.sigmoid(gates[:, 0:Hp])                    # lane-tile aligned
        f = jax.nn.sigmoid(gates[:, Hp:2 * Hp])
        g = jnp.tanh(gates[:, 2 * Hp:3 * Hp])
        o = jax.nn.sigmoid(gates[:, 3 * Hp:4 * Hp])
        c_sc[...] = f * c_sc[...] + i * g
        h_sc[...] = o * jnp.tanh(c_sc[...])
        out_ref[pl.ds(t, 1), :] = h_sc[...]
        return carry

    # Bounded unroll: overlaps step t+1's MXU push with step t's EUP/VPU tail
    # without exploding instruction count / compile time at production batch.
    jax.lax.fori_loop(0, S, step, 0, unroll=min(8, S))


def lstm_last_forward(x, fp):
    S = x.shape[0]
    Hp = fp["whh_T"].shape[0]
    x_last = x[:, -1, :]                   # (S, F): slice in XLA, not in-kernel
    vmem = pl.BlockSpec(memory_space=pltpu.MemorySpace.VMEM)
    # TODO(synk): on v7x, overlap this serial recurrence with the conv branch via
    # a core-parallel core_map so the second TensorCore is not idle during it.
    return pl.pallas_call(
        _lstm_kernel,
        out_shape=jax.ShapeDtypeStruct((S, Hp), jnp.float32),
        in_specs=[vmem, vmem, vmem, vmem],
        out_specs=vmem,
        scratch_shapes=[
            pltpu.VMEM((S, 4 * Hp), jnp.float32),   # hoisted input projection
            pltpu.VMEM((1, Hp), jnp.float32),       # h
            pltpu.VMEM((1, Hp), jnp.float32),       # c
        ],
    )(x_last, fp["wih_T"], fp["whh_T"], fp["b_lstm"])


# --------- fused Conv1d+BN+ReLU x3 + mean-pool (per batch tile) --------------
def _conv_pool_kernel(x_ref,
                      w1_ref, s1_ref, h1_ref,
                      w2_ref, s2_ref, h2_ref,
                      w3_ref, s3_ref, h3_ref,
                      o_ref):
    # x_ref:  (Bt, T, F) tile of batch elements, time-major (channels on lanes),
    #         so x.transpose(2,1) is free.
    # w*_ref: (K, Cin, Cout) bf16 conv taps; s*/h*: (1, Cout) f32 folded
    #         eval-mode BatchNorm scale/shift (conv bias folded into the shift).
    # o_ref:  (Bt, 1, C3) mean-pooled conv features (lane-dense at prod C3=128).
    Bt = x_ref.shape[0]

    def conv_bn_relu(x, w_ref, scale_ref, shift_ref):
        k = w_ref.shape[0]
        lout = x.shape[0] - k + 1
        xb = x.astype(jnp.bfloat16)            # one bf16 cast per layer
        # Per-tap accumulation: K Cin-wide MXU contractions; avoids the (K+1)x
        # im2col slice+concat VMEM copies of the previous version.
        acc = jnp.dot(xb[0:lout, :], w_ref[0], preferred_element_type=jnp.float32)
        for i in range(1, k):
            acc = acc + jnp.dot(xb[i:i + lout, :], w_ref[i],
                                preferred_element_type=jnp.float32)
        return jnp.maximum(acc * scale_ref[...] + shift_ref[...], 0.0)

    # TODO(synk): for production T, add L-tiling with a (K-1) halo so the
    # per-layer activations stay within v7x's 64 MiB VMEM.
    for b in range(Bt):                        # static inner batch loop
        x = x_ref[b]                           # (T, F)
        y = conv_bn_relu(x, w1_ref, s1_ref, h1_ref)    # (T-7,  C1)
        y = conv_bn_relu(y, w2_ref, s2_ref, h2_ref)    # (T-11, C2)
        y = conv_bn_relu(y, w3_ref, s3_ref, h3_ref)    # (T-13, C3)
        # nn.Dropout(0.3) layers are identity in eval mode.
        o_ref[b] = jnp.mean(y, axis=0, keepdims=True)  # == torch.mean(x2, 2)


def _pick_bt(B, cap=8):
    """Largest divisor of B that is <= cap (amortizes per-grid-step overhead)."""
    bt = 1
    for d in range(1, min(B, cap) + 1):
        if B % d == 0:
            bt = d
    return bt


def conv_pool_forward(x, fp):
    B, T, F = x.shape
    K1, _, C1 = fp["w1c"].shape
    K2, _, C2 = fp["w2c"].shape
    K3, _, C3 = fp["w3c"].shape
    Bt = _pick_bt(B)

    def rep(shape):  # full-array block, constant index map -> fetched once
        zeros = (0,) * len(shape)
        return pl.BlockSpec(shape, lambda b, z=zeros: z)

    out = pl.pallas_call(
        _conv_pool_kernel,
        out_shape=jax.ShapeDtypeStruct((B, 1, C3), jnp.float32),
        grid=(B // Bt,),
        in_specs=[
            pl.BlockSpec((Bt, T, F), lambda b: (b, 0, 0)),
            rep((K1, F, C1)), rep((1, C1)), rep((1, C1)),
            rep((K2, C1, C2)), rep((1, C2)), rep((1, C2)),
            rep((K3, C2, C3)), rep((1, C3)), rep((1, C3)),
        ],
        out_specs=pl.BlockSpec((Bt, 1, C3), lambda b: (b, 0, 0)),
        compiler_params=pltpu.CompilerParams(
            dimension_semantics=("parallel",),
            vmem_limit_bytes=64 * 1024 * 1024),
    )(x, fp["w1c"], fp["s1"], fp["h1"],
      fp["w2c"], fp["s2"], fp["h2"],
      fp["w3c"], fp["s3"], fp["h3"])
    return out.reshape(B, C3)


# ------------------------------ full forward --------------------------------
def lstmfcn_forward(x, fp):
    H = fp["fc_w1"].shape[0]
    x1 = lstm_last_forward(x, fp)[:, :H]       # (B, H)  drop lane padding
    x2 = conv_pool_forward(x, fp)              # (B, C3) pooled conv features
    # Tiny concat + Linear head in plain XLA; split FC weights avoid the concat.
    return x1 @ fp["fc_w1"] + x2 @ fp["fc_w2"] + fp["fc_b"]


# ------------------------------ parameters ----------------------------------
def init_params(key, F, H, C1, C2, C3, K1, K2, K3):
    """PyTorch-layout parameters (fresh-module init, BN in eval mode)."""
    ks = jax.random.split(key, 10)

    def u(k, shape, s):
        return jax.random.uniform(k, shape, jnp.float32, -s, s)

    p = {}
    s = 1.0 / math.sqrt(H)
    p["w_ih"] = u(ks[0], (4 * H, F), s)     # weight_ih_l0, gate order (i,f,g,o)
    p["w_hh"] = u(ks[1], (4 * H, H), s)
    p["b_ih"] = u(ks[2], (4 * H,), s)
    p["b_hh"] = u(ks[3], (4 * H,), s)

    def conv_init(k, cout, cin, ksz):
        sc = 1.0 / math.sqrt(cin * ksz)
        kw, kb = jax.random.split(k)
        return u(kw, (cout, cin, ksz), sc), u(kb, (cout,), sc)

    p["cw1"], p["cb1"] = conv_init(ks[4], C1, F, K1)
    p["cw2"], p["cb2"] = conv_init(ks[5], C2, C1, K2)
    p["cw3"], p["cb3"] = conv_init(ks[6], C3, C2, K3)

    # BatchNorm1d fresh-module (eval) stats: gamma=1, beta=0, mean=0, var=1.
    for name, c in (("1", C1), ("2", C2), ("3", C3)):
        p["g" + name] = jnp.ones((c,), jnp.float32)
        p["be" + name] = jnp.zeros((c,), jnp.float32)
        p["m" + name] = jnp.zeros((c,), jnp.float32)
        p["v" + name] = jnp.ones((c,), jnp.float32)

    s = 1.0 / math.sqrt(H + C3)
    p["fc_w"] = u(ks[7], (2, H + C3), s)    # nn.Linear(H + C3, 2): weight (2, H+C3)
    p["fc_b"] = u(ks[8], (2,), s)
    return p


def _pad_gate_cols(w, H, Hp):
    """Zero-pad the gate-major last axis 4H -> 4*Hp (per-gate column padding)."""
    lead = w.shape[:-1]
    w4 = w.reshape(lead + (4, H))
    pad = [(0, 0)] * (len(lead) + 1) + [(0, Hp - H)]
    return jnp.pad(w4, pad).reshape(lead + (4 * Hp,))


def fold_params(p, H, eps=1e-5):
    """One-time conversion to the kernel layout: transposes, per-gate lane
    padding, eval-mode BN/bias folding, bf16 cast of MXU weight operands."""
    fp = {}
    Hp = ((H + 127) // 128) * 128               # lane-tile aligned gate width

    wih_T = _pad_gate_cols(p["w_ih"].T, H, Hp)                       # (F, 4Hp)
    whh_T = _pad_gate_cols(
        jnp.pad(p["w_hh"].T, ((0, Hp - H), (0, 0))), H, Hp)          # (Hp, 4Hp)
    b_lstm = _pad_gate_cols(p["b_ih"] + p["b_hh"], H, Hp)            # (4Hp,)
    fp["wih_T"] = wih_T.astype(jnp.bfloat16)
    fp["whh_T"] = whh_T.astype(jnp.bfloat16)
    fp["b_lstm"] = b_lstm.reshape(1, 4 * Hp)                         # f32

    def fold_conv(w, b, g, be, m, v):
        cout, cin, k = w.shape
        # (Cout, Cin, K) -> (K, Cin, Cout): per-tap (Cin, Cout) MXU operands.
        w_taps = jnp.transpose(w, (2, 1, 0)).astype(jnp.bfloat16)
        scale = g / jnp.sqrt(v + eps)
        shift = (b - m) * scale + be                                 # bias folded
        return w_taps, scale.reshape(1, cout), shift.reshape(1, cout)

    fp["w1c"], fp["s1"], fp["h1"] = fold_conv(p["cw1"], p["cb1"], p["g1"], p["be1"], p["m1"], p["v1"])
    fp["w2c"], fp["s2"], fp["h2"] = fold_conv(p["cw2"], p["cb2"], p["g2"], p["be2"], p["m2"], p["v2"])
    fp["w3c"], fp["s3"], fp["h3"] = fold_conv(p["cw3"], p["cb3"], p["g3"], p["be3"], p["m3"], p["v3"])

    # torch.cat((x1, x2), dim=1): first H columns act on x1, next C3 on x2-mean.
    fp["fc_w1"] = p["fc_w"][:, :H].T            # (H, 2)   f32 (tiny XLA head)
    fp["fc_w2"] = p["fc_w"][:, H:].T            # (C3, 2)
    fp["fc_b"] = p["fc_b"].reshape(1, 2)
    return fp


# --------------------------- pure-JAX f32 reference -------------------------
def reference_forward(x, p, eps=1e-5):
    """Straightforward f32 re-implementation of the PyTorch forward (eval mode)."""
    B, T, F = x.shape
    H = p["w_hh"].shape[1]
    # nn.LSTM not batch_first: seq axis = dim0 (B), batch axis = dim1 (T); only
    # batch column T-1 reaches the head via lstm_out[:, -1, :].
    xt = x[:, -1, :]
    h = jnp.zeros((H,), jnp.float32)
    c = jnp.zeros((H,), jnp.float32)
    hs = []
    for s in range(B):
        gates = p["w_ih"] @ xt[s] + p["b_ih"] + p["w_hh"] @ h + p["b_hh"]
        i, f, g, o = jnp.split(gates, 4)
        i = jax.nn.sigmoid(i); f = jax.nn.sigmoid(f)
        g = jnp.tanh(g); o = jax.nn.sigmoid(o)
        c = f * c + i * g
        h = o * jnp.tanh(c)
        hs.append(h)
    x1 = jnp.stack(hs, axis=0)                                       # (B, H)

    def conv1d_valid(xc, w, b):        # xc (B, Cin, L), w (Cout, Cin, K)
        k = w.shape[2]
        lout = xc.shape[2] - k + 1
        y = jnp.broadcast_to(b[None, :, None], (xc.shape[0], w.shape[0], lout))
        for t in range(k):
            y = y + jnp.einsum("bcl,oc->bol", xc[:, :, t:t + lout], w[:, :, t])
        return y

    def bn_eval(xc, g, be, m, v):
        inv = g / jnp.sqrt(v + eps)
        return (xc - m[None, :, None]) * inv[None, :, None] + be[None, :, None]

    x2 = jnp.transpose(x, (0, 2, 1))                                 # (B, F, T)
    x2 = jax.nn.relu(bn_eval(conv1d_valid(x2, p["cw1"], p["cb1"]),
                             p["g1"], p["be1"], p["m1"], p["v1"]))
    x2 = jax.nn.relu(bn_eval(conv1d_valid(x2, p["cw2"], p["cb2"]),
                             p["g2"], p["be2"], p["m2"], p["v2"]))
    x2 = jax.nn.relu(bn_eval(conv1d_valid(x2, p["cw3"], p["cb3"]),
                             p["g3"], p["be3"], p["m3"], p["v3"]))
    x2 = jnp.mean(x2, axis=2)                                        # (B, C3)
    x_all = jnp.concatenate([x1, x2], axis=1)
    return x_all @ p["fc_w"].T + p["fc_b"][None, :]


if __name__ == "__main__":
    # Small shapes consistent with the module (isGRU=False, isOCT=False):
    # x: (B, N_time, N_Features); N_time must exceed 8+5+3-3=13 for the convs.
    B, T, F = 2, 16, 4
    H = 32                      # N_LSTM_Out (scaled down from 128)
    C1, C2, C3 = 32, 64, 32     # Conv1_NF / Conv2_NF / Conv3_NF (scaled down)
    K1, K2, K3 = 8, 5, 3

    key = jax.random.PRNGKey(0)
    kx, kp = jax.random.split(key)
    x = jax.random.normal(kx, (B, T, F), jnp.float32)
    params = init_params(kp, F, H, C1, C2, C3, K1, K2, K3)
    fp = fold_params(params, H)

    fwd = jax.jit(lstmfcn_forward)
    y = jax.block_until_ready(fwd(x, fp))
    assert y.shape == (B, 2) and bool(jnp.all(jnp.isfinite(y)))

    # Loose-tolerance check against the pure-JAX f32 reference (bf16 MXU operands
    # are intentionally not bit-exact).
    y_ref = reference_forward(x, params)
    assert bool(jnp.allclose(y, y_ref, rtol=5e-2, atol=1e-1)), (y, y_ref)
    print("KERNEL_OK")
</pallas_src>

<mosaic_0001>
module attributes {stable_mosaic.version = 11 : i64} {
  func.func @_conv_pool_kernel(%arg0: i32, %arg1: memref<2x16x4xf32, #tpu.memory_space<vmem>>, %arg2: memref<8x4x32xbf16, #tpu.memory_space<vmem>>, %arg3: memref<1x32xf32, #tpu.memory_space<vmem>>, %arg4: memref<1x32xf32, #tpu.memory_space<vmem>>, %arg5: memref<5x32x64xbf16, #tpu.memory_space<vmem>>, %arg6: memref<1x64xf32, #tpu.memory_space<vmem>>, %arg7: memref<1x64xf32, #tpu.memory_space<vmem>>, %arg8: memref<3x64x32xbf16, #tpu.memory_space<vmem>>, %arg9: memref<1x32xf32, #tpu.memory_space<vmem>>, %arg10: memref<1x32xf32, #tpu.memory_space<vmem>>, %arg11: memref<2x1x32xf32, #tpu.memory_space<vmem>>) attributes {dimension_semantics = [#tpu.dimension_semantics<parallel>], iteration_bounds = array<i64: 1>, scalar_prefetch = 0 : i64, scratch_operands = 0 : i64, tpu.core_type = #tpu.core_type<tc>, window_params = [{transform_indices = @transform_0, window_bounds = array<i64: 2, 16, 4>}, {pipeline_mode = #tpu.pipeline_mode<synchronous>, transform_indices = @transform_1, window_bounds = array<i64: 8, 4, 32>}, {pipeline_mode = #tpu.pipeline_mode<synchronous>, transform_indices = @transform_2, window_bounds = array<i64: 1, 32>}, {pipeline_mode = #tpu.pipeline_mode<synchronous>, transform_indices = @transform_3, window_bounds = array<i64: 1, 32>}, {pipeline_mode = #tpu.pipeline_mode<synchronous>, transform_indices = @transform_4, window_bounds = array<i64: 5, 32, 64>}, {pipeline_mode = #tpu.pipeline_mode<synchronous>, transform_indices = @transform_5, window_bounds = array<i64: 1, 64>}, {pipeline_mode = #tpu.pipeline_mode<synchronous>, transform_indices = @transform_6, window_bounds = array<i64: 1, 64>}, {pipeline_mode = #tpu.pipeline_mode<synchronous>, transform_indices = @transform_7, window_bounds = array<i64: 3, 64, 32>}, {pipeline_mode = #tpu.pipeline_mode<synchronous>, transform_indices = @transform_8, window_bounds = array<i64: 1, 32>}, {pipeline_mode = #tpu.pipeline_mode<synchronous>, transform_indices = @transform_9, window_bounds = array<i64: 1, 32>}, {transform_indices = @transform_10, window_bounds = array<i64: 2, 1, 32>}]} {
    %c0 = arith.constant 0 : index
    %c0_0 = arith.constant 0 : index
    %c0_1 = arith.constant 0 : index
    %0 = vector.load %arg1[%c0, %c0_0, %c0_1] : memref<2x16x4xf32, #tpu.memory_space<vmem>>, vector<1x16x4xf32>
    %1 = vector.shape_cast %0 : vector<1x16x4xf32> to vector<16x4xf32>
    %2 = arith.truncf %1 : vector<16x4xf32> to vector<16x4xbf16>
    %3 = vector.extract_strided_slice %2 {offsets = [0, 0], sizes = [9, 4], strides = [1, 1]} : vector<16x4xbf16> to vector<9x4xbf16>
    %c0_2 = arith.constant 0 : index
    %c0_3 = arith.constant 0 : index
    %c0_4 = arith.constant 0 : index
    %4 = vector.load %arg2[%c0_2, %c0_3, %c0_4] : memref<8x4x32xbf16, #tpu.memory_space<vmem>>, vector<1x4x32xbf16>
    %5 = vector.shape_cast %4 : vector<1x4x32xbf16> to vector<4x32xbf16>
    %cst = arith.constant dense<0.000000e+00> : vector<9x32xf32>
    %6 = tpu.matmul %3, %5, %cst {dimension_numbers = #tpu.dot_dimension_numbers<[1], [0], [0], [1], [0, 0, 1, 1], [], []>} : vector<9x4xbf16>, vector<4x32xbf16>, vector<9x32xf32> -> vector<9x32xf32>
    %7 = vector.extract_strided_slice %2 {offsets = [1, 0], sizes = [9, 4], strides = [1, 1]} : vector<16x4xbf16> to vector<9x4xbf16>
    %c1 = arith.constant 1 : index
    %c0_5 = arith.constant 0 : index
    %c0_6 = arith.constant 0 : index
    %8 = vector.load %arg2[%c1, %c0_5, %c0_6] : memref<8x4x32xbf16, #tpu.memory_space<vmem>>, vector<1x4x32xbf16>
    %9 = vector.shape_cast %8 : vector<1x4x32xbf16> to vector<4x32xbf16>
    %cst_7 = arith.constant dense<0.000000e+00> : vector<9x32xf32>
    %10 = tpu.matmul %7, %9, %cst_7 {dimension_numbers = #tpu.dot_dimension_numbers<[1], [0], [0], [1], [0, 0, 1, 1], [], []>} : vector<9x4xbf16>, vector<4x32xbf16>, vector<9x32xf32> -> vector<9x32xf32>
    %11 = arith.addf %6, %10 : vector<9x32xf32>
    %12 = vector.extract_strided_slice %2 {offsets = [2, 0], sizes = [9, 4], strides = [1, 1]} : vector<16x4xbf16> to vector<9x4xbf16>
    %c2 = arith.constant 2 : index
    %c0_8 = arith.constant 0 : index
    %c0_9 = arith.constant 0 : index
    %13 = vector.load %arg2[%c2, %c0_8, %c0_9] : memref<8x4x32xbf16, #tpu.memory_space<vmem>>, vector<1x4x32xbf16>
    %14 = vector.shape_cast %13 : vector<1x4x32xbf16> to vector<4x32xbf16>
    %cst_10 = arith.constant dense<0.000000e+00> : vector<9x32xf32>
    %15 = tpu.matmul %12, %14, %cst_10 {dimension_numbers = #tpu.dot_dimension_numbers<[1], [0], [0], [1], [0, 0, 1, 1], [], []>} : vector<9x4xbf16>, vector<4x32xbf16>, vector<9x32xf32> -> vector<9x32xf32>
    %16 = arith.addf %11, %15 : vector<9x32xf32>
    %17 = vector.extract_strided_slice %2 {offsets = [3, 0], sizes = [9, 4], strides = [1, 1]} : vector<16x4xbf16> to vector<9x4xbf16>
    %c3 = arith.constant 3 : index
    %c0_11 = arith.constant 0 : index
    %c0_12 = arith.constant 0 : index
    %18 = vector.load %arg2[%c3, %c0_11, %c0_12] : memref<8x4x32xbf16, #tpu.memory_space<vmem>>, vector<1x4x32xbf16>
    %19 = vector.shape_cast %18 : vector<1x4x32xbf16> to vector<4x32xbf16>
    %cst_13 = arith.constant dense<0.000000e+00> : vector<9x32xf32>
    %20 = tpu.matmul %17, %19, %cst_13 {dimension_numbers = #tpu.dot_dimension_numbers<[1], [0], [0], [1], [0, 0, 1, 1], [], []>} : vector<9x4xbf16>, vector<4x32xbf16>, vector<9x32xf32> -> vector<9x32xf32>
    %21 = arith.addf %16, %20 : vector<9x32xf32>
    %22 = vector.extract_strided_slice %2 {offsets = [4, 0], sizes = [9, 4], strides = [1, 1]} : vector<16x4xbf16> to vector<9x4xbf16>
    %c4 = arith.constant 4 : index
    %c0_14 = arith.constant 0 : index
    %c0_15 = arith.constant 0 : index
    %23 = vector.load %arg2[%c4, %c0_14, %c0_15] : memref<8x4x32xbf16, #tpu.memory_space<vmem>>, vector<1x4x32xbf16>
    %24 = vector.shape_cast %23 : vector<1x4x32xbf16> to vector<4x32xbf16>
    %cst_16 = arith.constant dense<0.000000e+00> : vector<9x32xf32>
    %25 = tpu.matmul %22, %24, %cst_16 {dimension_numbers = #tpu.dot_dimension_numbers<[1], [0], [0], [1], [0, 0, 1, 1], [], []>} : vector<9x4xbf16>, vector<4x32xbf16>, vector<9x32xf32> -> vector<9x32xf32>
    %26 = arith.addf %21, %25 : vector<9x32xf32>
    %27 = vector.extract_strided_slice %2 {offsets = [5, 0], sizes = [9, 4], strides = [1, 1]} : vector<16x4xbf16> to vector<9x4xbf16>
    %c5 = arith.constant 5 : index
    %c0_17 = arith.constant 0 : index
    %c0_18 = arith.constant 0 : index
    %28 = vector.load %arg2[%c5, %c0_17, %c0_18] : memref<8x4x32xbf16, #tpu.memory_space<vmem>>, vector<1x4x32xbf16>
    %29 = vector.shape_cast %28 : vector<1x4x32xbf16> to vector<4x32xbf16>
    %cst_19 = arith.constant dense<0.000000e+00> : vector<9x32xf32>
    %30 = tpu.matmul %27, %29, %cst_19 {dimension_numbers = #tpu.dot_dimension_numbers<[1], [0], [0], [1], [0, 0, 1, 1], [], []>} : vector<9x4xbf16>, vector<4x32xbf16>, vector<9x32xf32> -> vector<9x32xf32>
    %31 = arith.addf %26, %30 : vector<9x32xf32>
    %32 = vector.extract_strided_slice %2 {offsets = [6, 0], sizes = [9, 4], strides = [1, 1]} : vector<16x4xbf16> to vector<9x4xbf16>
    %c6 = arith.constant 6 : index
    %c0_20 = arith.constant 0 : index
    %c0_21 = arith.constant 0 : index
    %33 = vector.load %arg2[%c6, %c0_20, %c0_21] : memref<8x4x32xbf16, #tpu.memory_space<vmem>>, vector<1x4x32xbf16>
    %34 = vector.shape_cast %33 : vector<1x4x32xbf16> to vector<4x32xbf16>
    %cst_22 = arith.constant dense<0.000000e+00> : vector<9x32xf32>
    %35 = tpu.matmul %32, %34, %cst_22 {dimension_numbers = #tpu.dot_dimension_numbers<[1], [0], [0], [1], [0, 0, 1, 1], [], []>} : vector<9x4xbf16>, vector<4x32xbf16>, vector<9x32xf32> -> vector<9x32xf32>
    %36 = arith.addf %31, %35 : vector<9x32xf32>
    %37 = vector.extract_strided_slice %2 {offsets = [7, 0], sizes = [9, 4], strides = [1, 1]} : vector<16x4xbf16> to vector<9x4xbf16>
    %c7 = arith.constant 7 : index
    %c0_23 = arith.constant 0 : index
    %c0_24 = arith.constant 0 : index
    %38 = vector.load %arg2[%c7, %c0_23, %c0_24] : memref<8x4x32xbf16, #tpu.memory_space<vmem>>, vector<1x4x32xbf16>
    %39 = vector.shape_cast %38 : vector<1x4x32xbf16> to vector<4x32xbf16>
    %cst_25 = arith.constant dense<0.000000e+00> : vector<9x32xf32>
    %40 = tpu.matmul %37, %39, %cst_25 {dimension_numbers = #tpu.dot_dimension_numbers<[1], [0], [0], [1], [0, 0, 1, 1], [], []>} : vector<9x4xbf16>, vector<4x32xbf16>, vector<9x32xf32> -> vector<9x32xf32>
    %41 = arith.addf %36, %40 : vector<9x32xf32>
    %c0_26 = arith.constant 0 : index
    %c0_27 = arith.constant 0 : index
    %42 = vector.load %arg3[%c0_26, %c0_27] : memref<1x32xf32, #tpu.memory_space<vmem>>, vector<1x32xf32>
    %43 = vector.broadcast %42 : vector<1x32xf32> to vector<9x32xf32>
    %44 = arith.mulf %41, %43 : vector<9x32xf32>
    %c0_28 = arith.constant 0 : index
    %c0_29 = arith.constant 0 : index
    %45 = vector.load %arg4[%c0_28, %c0_29] : memref<1x32xf32, #tpu.memory_space<vmem>>, vector<1x32xf32>
    %46 = vector.broadcast %45 : vector<1x32xf32> to vector<9x32xf32>
    %47 = arith.addf %44, %46 : vector<9x32xf32>
    %cst_30 = arith.constant 0.000000e+00 : f32
    %48 = vector.broadcast %cst_30 : f32 to vector<9x32xf32>
    %49 = arith.maximumf %47, %48 : vector<9x32xf32>
    %50 = arith.truncf %49 : vector<9x32xf32> to vector<9x32xbf16>
    %51 = vector.extract_strided_slice %50 {offsets = [0, 0], sizes = [5, 32], strides = [1, 1]} : vector<9x32xbf16> to vector<5x32xbf16>
    %c0_31 = arith.constant 0 : index
    %c0_32 = arith.constant 0 : index
    %c0_33 = arith.constant 0 : index
    %52 = vector.load %arg5[%c0_31, %c0_32, %c0_33] : memref<5x32x64xbf16, #tpu.memory_space<vmem>>, vector<1x32x64xbf16>
    %53 = vector.shape_cast %52 : vector<1x32x64xbf16> to vector<32x64xbf16>
    %cst_34 = arith.constant dense<0.000000e+00> : vector<5x64xf32>
    %54 = tpu.matmul %51, %53, %cst_34 {dimension_numbers = #tpu.dot_dimension_numbers<[1], [0], [0], [1], [0, 0, 1, 1], [], []>} : vector<5x32xbf16>, vector<32x64xbf16>, vector<5x64xf32> -> vector<5x64xf32>
    %55 = vector.extract_strided_slice %50 {offsets = [1, 0], sizes = [5, 32], strides = [1, 1]} : vector<9x32xbf16> to vector<5x32xbf16>
    %c1_35 = arith.constant 1 : index
    %c0_36 = arith.constant 0 : index
    %c0_37 = arith.constant 0 : index
    %56 = vector.load %arg5[%c1_35, %c0_36, %c0_37] : memref<5x32x64xbf16, #tpu.memory_space<vmem>>, vector<1x32x64xbf16>
    %57 = vector.shape_cast %56 : vector<1x32x64xbf16> to vector<32x64xbf16>
    %cst_38 = arith.constant dense<0.000000e+00> : vector<5x64xf32>
    %58 = tpu.matmul %55, %57, %cst_38 {dimension_numbers = #tpu.dot_dimension_numbers<[1], [0], [0], [1], [0, 0, 1, 1], [], []>} : vector<5x32xbf16>, vector<32x64xbf16>, vector<5x64xf32> -> vector<5x64xf32>
    %59 = arith.addf %54, %58 : vector<5x64xf32>
    %60 = vector.extract_strided_slice %50 {offsets = [2, 0], sizes = [5, 32], strides = [1, 1]} : vector<9x32xbf16> to vector<5x32xbf16>
    %c2_39 = arith.constant 2 : index
    %c0_40 = arith.constant 0 : index
    %c0_41 = arith.constant 0 : index
    %61 = vector.load %arg5[%c2_39, %c0_40, %c0_41] : memref<5x32x64xbf16, #tpu.memory_space<vmem>>, vector<1x32x64xbf16>
    %62 = vector.shape_cast %61 : vector<1x32x64xbf16> to vector<32x64xbf16>
    %cst_42 = arith.constant dense<0.000000e+00> : vector<5x64xf32>
    %63 = tpu.matmul %60, %62, %cst_42 {dimension_numbers = #tpu.dot_dimension_numbers<[1], [0], [0], [1], [0, 0, 1, 1], [], []>} : vector<5x32xbf16>, vector<32x64xbf16>, vector<5x64xf32> -> vector<5x64xf32>
    %64 = arith.addf %59, %63 : vector<5x64xf32>
    %65 = vector.extract_strided_slice %50 {offsets = [3, 0], sizes = [5, 32], strides = [1, 1]} : vector<9x32xbf16> to vector<5x32xbf16>
    %c3_43 = arith.constant 3 : index
    %c0_44 = arith.constant 0 : index
    %c0_45 = arith.constant 0 : index
    %66 = vector.load %arg5[%c3_43, %c0_44, %c0_45] : memref<5x32x64xbf16, #tpu.memory_space<vmem>>, vector<1x32x64xbf16>
    %67 = vector.shape_cast %66 : vector<1x32x64xbf16> to vector<32x64xbf16>
    %cst_46 = arith.constant dense<0.000000e+00> : vector<5x64xf32>
    %68 = tpu.matmul %65, %67, %cst_46 {dimension_numbers = #tpu.dot_dimension_numbers<[1], [0], [0], [1], [0, 0, 1, 1], [], []>} : vector<5x32xbf16>, vector<32x64xbf16>, vector<5x64xf32> -> vector<5x64xf32>
    %69 = arith.addf %64, %68 : vector<5x64xf32>
    %70 = vector.extract_strided_slice %50 {offsets = [4, 0], sizes = [5, 32], strides = [1, 1]} : vector<9x32xbf16> to vector<5x32xbf16>
    %c4_47 = arith.constant 4 : index
    %c0_48 = arith.constant 0 : index
    %c0_49 = arith.constant 0 : index
    %71 = vector.load %arg5[%c4_47, %c0_48, %c0_49] : memref<5x32x64xbf16, #tpu.memory_space<vmem>>, vector<1x32x64xbf16>
    %72 = vector.shape_cast %71 : vector<1x32x64xbf16> to vector<32x64xbf16>
    %cst_50 = arith.constant dense<0.000000e+00> : vector<5x64xf32>
    %73 = tpu.matmul %70, %72, %cst_50 {dimension_numbers = #tpu.dot_dimension_numbers<[1], [0], [0], [1], [0, 0, 1, 1], [], []>} : vector<5x32xbf16>, vector<32x64xbf16>, vector<5x64xf32> -> vector<5x64xf32>
    %74 = arith.addf %69, %73 : vector<5x64xf32>
    %c0_51 = arith.constant 0 : index
    %c0_52 = arith.constant 0 : index
    %75 = vector.load %arg6[%c0_51, %c0_52] : memref<1x64xf32, #tpu.memory_space<vmem>>, vector<1x64xf32>
    %76 = vector.broadcast %75 : vector<1x64xf32> to vector<5x64xf32>
    %77 = arith.mulf %74, %76 : vector<5x64xf32>
    %c0_53 = arith.constant 0 : index
    %c0_54 = arith.constant 0 : index
    %78 = vector.load %arg7[%c0_53, %c0_54] : memref<1x64xf32, #tpu.memory_space<vmem>>, vector<1x64xf32>
    %79 = vector.broadcast %78 : vector<1x64xf32> to vector<5x64xf32>
    %80 = arith.addf %77, %79 : vector<5x64xf32>
    %cst_55 = arith.constant 0.000000e+00 : f32
    %81 = vector.broadcast %cst_55 : f32 to vector<5x64xf32>
    %82 = arith.maximumf %80, %81 : vector<5x64xf32>
    %83 = arith.truncf %82 : vector<5x64xf32> to vector<5x64xbf16>
    %84 = vector.extract_strided_slice %83 {offsets = [0, 0], sizes = [3, 64], strides = [1, 1]} : vector<5x64xbf16> to vector<3x64xbf16>
    %c0_56 = arith.constant 0 : index
    %c0_57 = arith.constant 0 : index
    %c0_58 = arith.constant 0 : index
    %85 = vector.load %arg8[%c0_56, %c0_57, %c0_58] : memref<3x64x32xbf16, #tpu.memory_space<vmem>>, vector<1x64x32xbf16>
    %86 = vector.shape_cast %85 : vector<1x64x32xbf16> to vector<64x32xbf16>
    %cst_59 = arith.constant dense<0.000000e+00> : vector<3x32xf32>
    %87 = tpu.matmul %84, %86, %cst_59 {dimension_numbers = #tpu.dot_dimension_numbers<[1], [0], [0], [1], [0, 0, 1, 1], [], []>} : vector<3x64xbf16>, vector<64x32xbf16>, vector<3x32xf32> -> vector<3x32xf32>
    %88 = vector.extract_strided_slice %83 {offsets = [1, 0], sizes = [3, 64], strides = [1, 1]} : vector<5x64xbf16> to vector<3x64xbf16>
    %c1_60 = arith.constant 1 : index
    %c0_61 = arith.constant 0 : index
    %c0_62 = arith.constant 0 : index
    %89 = vector.load %arg8[%c1_60, %c0_61, %c0_62] : memref<3x64x32xbf16, #tpu.memory_space<vmem>>, vector<1x64x32xbf16>
    %90 = vector.shape_cast %89 : vector<1x64x32xbf16> to vector<64x32xbf16>
    %cst_63 = arith.constant dense<0.000000e+00> : vector<3x32xf32>
    %91 = tpu.matmul %88, %90, %cst_63 {dimension_numbers = #tpu.dot_dimension_numbers<[1], [0], [0], [1], [0, 0, 1, 1], [], []>} : vector<3x64xbf16>, vector<64x32xbf16>, vector<3x32xf32> -> vector<3x32xf32>
    %92 = arith.addf %87, %91 : vector<3x32xf32>
    %93 = vector.extract_strided_slice %83 {offsets = [2, 0], sizes = [3, 64], strides = [1, 1]} : vector<5x64xbf16> to vector<3x64xbf16>
    %c2_64 = arith.constant 2 : index
    %c0_65 = arith.constant 0 : index
    %c0_66 = arith.constant 0 : index
    %94 = vector.load %arg8[%c2_64, %c0_65, %c0_66] : memref<3x64x32xbf16, #tpu.memory_space<vmem>>, vector<1x64x32xbf16>
    %95 = vector.shape_cast %94 : vector<1x64x32xbf16> to vector<64x32xbf16>
    %cst_67 = arith.constant dense<0.000000e+00> : vector<3x32xf32>
    %96 = tpu.matmul %93, %95, %cst_67 {dimension_numbers = #tpu.dot_dimension_numbers<[1], [0], [0], [1], [0, 0, 1, 1], [], []>} : vector<3x64xbf16>, vector<64x32xbf16>, vector<3x32xf32> -> vector<3x32xf32>
    %97 = arith.addf %92, %96 : vector<3x32xf32>
    %c0_68 = arith.constant 0 : index
    %c0_69 = arith.constant 0 : index
    %98 = vector.load %arg9[%c0_68, %c0_69] : memref<1x32xf32, #tpu.memory_space<vmem>>, vector<1x32xf32>
    %99 = vector.broadcast %98 : vector<1x32xf32> to vector<3x32xf32>
    %100 = arith.mulf %97, %99 : vector<3x32xf32>
    %c0_70 = arith.constant 0 : index
    %c0_71 = arith.constant 0 : index
    %101 = vector.load %arg10[%c0_70, %c0_71] : memref<1x32xf32, #tpu.memory_space<vmem>>, vector<1x32xf32>
    %102 = vector.broadcast %101 : vector<1x32xf32> to vector<3x32xf32>
    %103 = arith.addf %100, %102 : vector<3x32xf32>
    %cst_72 = arith.constant 0.000000e+00 : f32
    %104 = vector.broadcast %cst_72 : f32 to vector<3x32xf32>
    %105 = arith.maximumf %103, %104 : vector<3x32xf32>
    %cst_73 = arith.constant dense<0.000000e+00> : vector<32xf32>
    %106 = vector.multi_reduction <add>, %105, %cst_73 [0] : vector<3x32xf32> to vector<32xf32>
    %107 = vector.shape_cast %106 : vector<32xf32> to vector<1x32xf32>
    %cst_74 = arith.constant 3.000000e+00 : f32
    %108 = vector.broadcast %cst_74 : f32 to vector<1x32xf32>
    %109 = arith.divf %107, %108 : vector<1x32xf32>
    %c0_75 = arith.constant 0 : index
    %c0_76 = arith.constant 0 : index
    %c0_77 = arith.constant 0 : index
    %110 = vector.load %arg11[%c0_75, %c0_76, %c0_77] : memref<2x1x32xf32, #tpu.memory_space<vmem>>, vector<1x1x32xf32>
    %111 = vector.shape_cast %110 : vector<1x1x32xf32> to vector<1x32xf32>
    %112 = vector.shape_cast %109 : vector<1x32xf32> to vector<1x1x32xf32>
    tpu.vector_store %arg11[%c0_75, %c0_76, %c0_77], %112 {strides = array<i32>} : memref<2x1x32xf32, #tpu.memory_space<vmem>>, vector<1x1x32xf32>,
    %c1_78 = arith.constant 1 : index
    %c0_79 = arith.constant 0 : index
    %c0_80 = arith.constant 0 : index
    %113 = vector.load %arg1[%c1_78, %c0_79, %c0_80] : memref<2x16x4xf32, #tpu.memory_space<vmem>>, vector<1x16x4xf32>
    %114 = vector.shape_cast %113 : vector<1x16x4xf32> to vector<16x4xf32>
    %115 = arith.truncf %114 : vector<16x4xf32> to vector<16x4xbf16>
    %116 = vector.extract_strided_slice %115 {offsets = [0, 0], sizes = [9, 4], strides = [1, 1]} : vector<16x4xbf16> to vector<9x4xbf16>
    %c0_81 = arith.constant 0 : index
    %c0_82 = arith.constant 0 : index
    %c0_83 = arith.constant 0 : index
    %117 = vector.load %arg2[%c0_81, %c0_82, %c0_83] : memref<8x4x32xbf16, #tpu.memory_space<vmem>>, vector<1x4x32xbf16>
    %118 = vector.shape_cast %117 : vector<1x4x32xbf16> to vector<4x32xbf16>
    %cst_84 = arith.constant dense<0.000000e+00> : vector<9x32xf32>
    %119 = tpu.matmul %116, %118, %cst_84 {dimension_numbers = #tpu.dot_dimension_numbers<[1], [0], [0], [1], [0, 0, 1, 1], [], []>} : vector<9x4xbf16>, vector<4x32xbf16>, vector<9x32xf32> -> vector<9x32xf32>
    %120 = vector.extract_strided_slice %115 {offsets = [1, 0], sizes = [9, 4], strides = [1, 1]} : vector<16x4xbf16> to vector<9x4xbf16>
    %c1_85 = arith.constant 1 : index
    %c0_86 = arith.constant 0 : index
    %c0_87 = arith.constant 0 : index
    %121 = vector.load %arg2[%c1_85, %c0_86, %c0_87] : memref<8x4x32xbf16, #tpu.memory_space<vmem>>, vector<1x4x32xbf16>
    %122 = vector.shape_cast %121 : vector<1x4x32xbf16> to vector<4x32xbf16>
    %cst_88 = arith.constant dense<0.000000e+00> : vector<9x32xf32>
    %123 = tpu.matmul %120, %122, %cst_88 {dimension_numbers = #tpu.dot_dimension_numbers<[1], [0], [0], [1], [0, 0, 1, 1], [], []>} : vector<9x4xbf16>, vector<4x32xbf16>, vector<9x32xf32> -> vector<9x32xf32>
    %124 = arith.addf %119, %123 : vector<9x32xf32>
    %125 = vector.extract_strided_slice %115 {offsets = [2, 0], sizes = [9, 4], strides = [1, 1]} : vector<16x4xbf16> to vector<9x4xbf16>
    %c2_89 = arith.constant 2 : index
    %c0_90 = arith.constant 0 : index
    %c0_91 = arith.constant 0 : index
    %126 = vector.load %arg2[%c2_89, %c0_90, %c0_91] : memref<8x4x32xbf16, #tpu.memory_space<vmem>>, vector<1x4x32xbf16>
    %127 = vector.shape_cast %126 : vector<1x4x32xbf16> to vector<4x32xbf16>
    %cst_92 = arith.constant dense<0.000000e+00> : vector<9x32xf32>
    %128 = tpu.matmul %125, %127, %cst_92 {dimension_numbers = #tpu.dot_dimension_numbers<[1], [0], [0], [1], [0, 0, 1, 1], [], []>} : vector<9x4xbf16>, vector<4x32xbf16>, vector<9x32xf32> -> vector<9x32xf32>
    %129 = arith.addf %124, %128 : vector<9x32xf32>
    %130 = vector.extract_strided_slice %115 {offsets = [3, 0], sizes = [9, 4], strides = [1, 1]} : vector<16x4xbf16> to vector<9x4xbf16>
    %c3_93 = arith.constant 3 : index
    %c0_94 = arith.constant 0 : index
    %c0_95 = arith.constant 0 : index
    %131 = vector.load %arg2[%c3_93, %c0_94, %c0_95] : memref<8x4x32xbf16, #tpu.memory_space<vmem>>, vector<1x4x32xbf16>
    %132 = vector.shape_cast %131 : vector<1x4x32xbf16> to vector<4x32xbf16>
    %cst_96 = arith.constant dense<0.000000e+00> : vector<9x32xf32>
    %133 = tpu.matmul %130, %132, %cst_96 {dimension_numbers = #tpu.dot_dimension_numbers<[1], [0], [0], [1], [0, 0, 1, 1], [], []>} : vector<9x4xbf16>, vector<4x32xbf16>, vector<9x32xf32> -> vector<9x32xf32>
    %134 = arith.addf %129, %133 : vector<9x32xf32>
    %135 = vector.extract_strided_slice %115 {offsets = [4, 0], sizes = [9, 4], strides = [1, 1]} : vector<16x4xbf16> to vector<9x4xbf16>
    %c4_97 = arith.constant 4 : index
    %c0_98 = arith.constant 0 : index
    %c0_99 = arith.constant 0 : index
    %136 = vector.load %arg2[%c4_97, %c0_98, %c0_99] : memref<8x4x32xbf16, #tpu.memory_space<vmem>>, vector<1x4x32xbf16>
    %137 = vector.shape_cast %136 : vector<1x4x32xbf16> to vector<4x32xbf16>
    %cst_100 = arith.constant dense<0.000000e+00> : vector<9x32xf32>
    %138 = tpu.matmul %135, %137, %cst_100 {dimension_numbers = #tpu.dot_dimension_numbers<[1], [0], [0], [1], [0, 0, 1, 1], [], []>} : vector<9x4xbf16>, vector<4x32xbf16>, vector<9x32xf32> -> vector<9x32xf32>
    %139 = arith.addf %134, %138 : vector<9x32xf32>
    %140 = vector.extract_strided_slice %115 {offsets = [5, 0], sizes = [9, 4], strides = [1, 1]} : vector<16x4xbf16> to vector<9x4xbf16>
    %c5_101 = arith.constant 5 : index
    %c0_102 = arith.constant 0 : index
    %c0_103 = arith.constant 0 : index
    %141 = vector.load %arg2[%c5_101, %c0_102, %c0_103] : memref<8x4x32xbf16, #tpu.memory_space<vmem>>, vector<1x4x32xbf16>
    %142 = vector.shape_cast %141 : vector<1x4x32xbf16> to vector<4x32xbf16>
    %cst_104 = arith.constant dense<0.000000e+00> : vector<9x32xf32>
    %143 = tpu.matmul %140, %142, %cst_104 {dimension_numbers = #tpu.dot_dimension_numbers<[1], [0], [0], [1], [0, 0, 1, 1], [], []>} : vector<9x4xbf16>, vector<4x32xbf16>, vector<9x32xf32> -> vector<9x32xf32>
    %144 = arith.addf %139, %143 : vector<9x32xf32>
    %145 = vector.extract_strided_slice %115 {offsets = [6, 0], sizes = [9, 4], strides = [1, 1]} : vector<16x4xbf16> to vector<9x4xbf16>
    %c6_105 = arith.constant 6 : index
    %c0_106 = arith.constant 0 : index
    %c0_107 = arith.constant 0 : index
    %146 = vector.load %arg2[%c6_105, %c0_106, %c0_107] : memref<8x4x32xbf16, #tpu.memory_space<vmem>>, vector<1x4x32xbf16>
    %147 = vector.shape_cast %146 : vector<1x4x32xbf16> to vector<4x32xbf16>
    %cst_108 = arith.constant dense<0.000000e+00> : vector<9x32xf32>
    %148 = tpu.matmul %145, %147, %cst_108 {dimension_numbers = #tpu.dot_dimension_numbers<[1], [0], [0], [1], [0, 0, 1, 1], [], []>} : vector<9x4xbf16>, vector<4x32xbf16>, vector<9x32xf32> -> vector<9x32xf32>
    %149 = arith.addf %144, %148 : vector<9x32xf32>
    %150 = vector.extract_strided_slice %115 {offsets = [7, 0], sizes = [9, 4], strides = [1, 1]} : vector<16x4xbf16> to vector<9x4xbf16>
    %c7_109 = arith.constant 7 : index
    %c0_110 = arith.constant 0 : index
    %c0_111 = arith.constant 0 : index
    %151 = vector.load %arg2[%c7_109, %c0_110, %c0_111] : memref<8x4x32xbf16, #tpu.memory_space<vmem>>, vector<1x4x32xbf16>
    %152 = vector.shape_cast %151 : vector<1x4x32xbf16> to vector<4x32xbf16>
    %cst_112 = arith.constant dense<0.000000e+00> : vector<9x32xf32>
    %153 = tpu.matmul %150, %152, %cst_112 {dimension_numbers = #tpu.dot_dimension_numbers<[1], [0], [0], [1], [0, 0, 1, 1], [], []>} : vector<9x4xbf16>, vector<4x32xbf16>, vector<9x32xf32> -> vector<9x32xf32>
    %154 = arith.addf %149, %153 : vector<9x32xf32>
    %c0_113 = arith.constant 0 : index
    %c0_114 = arith.constant 0 : index
    %155 = vector.load %arg3[%c0_113, %c0_114] : memref<1x32xf32, #tpu.memory_space<vmem>>, vector<1x32xf32>
    %156 = vector.broadcast %155 : vector<1x32xf32> to vector<9x32xf32>
    %157 = arith.mulf %154, %156 : vector<9x32xf32>
    %c0_115 = arith.constant 0 : index
    %c0_116 = arith.constant 0 : index
    %158 = vector.load %arg4[%c0_115, %c0_116] : memref<1x32xf32, #tpu.memory_space<vmem>>, vector<1x32xf32>
    %159 = vector.broadcast %158 : vector<1x32xf32> to vector<9x32xf32>
    %160 = arith.addf %157, %159 : vector<9x32xf32>
    %cst_117 = arith.constant 0.000000e+00 : f32
    %161 = vector.broadcast %cst_117 : f32 to vector<9x32xf32>
    %162 = arith.maximumf %160, %161 : vector<9x32xf32>
    %163 = arith.truncf %162 : vector<9x32xf32> to vector<9x32xbf16>
    %164 = vector.extract_strided_slice %163 {offsets = [0, 0], sizes = [5, 32], strides = [1, 1]} : vector<9x32xbf16> to vector<5x32xbf16>
    %c0_118 = arith.constant 0 : index
    %c0_119 = arith.constant 0 : index
    %c0_120 = arith.constant 0 : index
    %165 = vector.load %arg5[%c0_118, %c0_119, %c0_120] : memref<5x32x64xbf16, #tpu.memory_space<vmem>>, vector<1x32x64xbf16>
    %166 = vector.shape_cast %165 : vector<1x32x64xbf16> to vector<32x64xbf16>
    %cst_121 = arith.constant dense<0.000000e+00> : vector<5x64xf32>
    %167 = tpu.matmul %164, %166, %cst_121 {dimension_numbers = #tpu.dot_dimension_numbers<[1], [0], [0], [1], [0, 0, 1, 1], [], []>} : vector<5x32xbf16>, vector<32x64xbf16>, vector<5x64xf32> -> vector<5x64xf32>
    %168 = vector.extract_strided_slice %163 {offsets = [1, 0], sizes = [5, 32], strides = [1, 1]} : vector<9x32xbf16> to vector<5x32xbf16>
    %c1_122 = arith.constant 1 : index
    %c0_123 = arith.constant 0 : index
    %c0_124 = arith.constant 0 : index
    %169 = vector.load %arg5[%c1_122, %c0_123, %c0_124] : memref<5x32x64xbf16, #tpu.memory_space<vmem>>, vector<1x32x64xbf16>
    %170 = vector.shape_cast %169 : vector<1x32x64xbf16> to vector<32x64xbf16>
    %cst_125 = arith.constant dense<0.000000e+00> : vector<5x64xf32>
    %171 = tpu.matmul %168, %170, %cst_125 {dimension_numbers = #tpu.dot_dimension_numbers<[1], [0], [0], [1], [0, 0, 1, 1], [], []>} : vector<5x32xbf16>, vector<32x64xbf16>, vector<5x64xf32> -> vector<5x64xf32>
    %172 = arith.addf %167, %171 : vector<5x64xf32>
    %173 = vector.extract_strided_slice %163 {offsets = [2, 0], sizes = [5, 32], strides = [1, 1]} : vector<9x32xbf16> to vector<5x32xbf16>
    %c2_126 = arith.constant 2 : index
    %c0_127 = arith.constant 0 : index
    %c0_128 = arith.constant 0 : index
    %174 = vector.load %arg5[%c2_126, %c0_127, %c0_128] : memref<5x32x64xbf16, #tpu.memory_space<vmem>>, vector<1x32x64xbf16>
    %175 = vector.shape_cast %174 : vector<1x32x64xbf16> to vector<32x64xbf16>
    %cst_129 = arith.constant dense<0.000000e+00> : vector<5x64xf32>
    %176 = tpu.matmul %173, %175, %cst_129 {dimension_numbers = #tpu.dot_dimension_numbers<[1], [0], [0], [1], [0, 0, 1, 1], [], []>} : vector<5x32xbf16>, vector<32x64xbf16>, vector<5x64xf32> -> vector<5x64xf32>
    %177 = arith.addf %172, %176 : vector<5x64xf32>
    %178 = vector.extract_strided_slice %163 {offsets = [3, 0], sizes = [5, 32], strides = [1, 1]} : vector<9x32xbf16> to vector<5x32xbf16>
    %c3_130 = arith.constant 3 : index
    %c0_131 = arith.constant 0 : index
    %c0_132 = arith.constant 0 : index
    %179 = vector.load %arg5[%c3_130, %c0_131, %c0_132] : memref<5x32x64xbf16, #tpu.memory_space<vmem>>, vector<1x32x64xbf16>
    %180 = vector.shape_cast %179 : vector<1x32x64xbf16> to vector<32x64xbf16>
    %cst_133 = arith.constant dense<0.000000e+00> : vector<5x64xf32>
    %181 = tpu.matmul %178, %180, %cst_133 {dimension_numbers = #tpu.dot_dimension_numbers<[1], [0], [0], [1], [0, 0, 1, 1], [], []>} : vector<5x32xbf16>, vector<32x64xbf16>, vector<5x64xf32> -> vector<5x64xf32>
    %182 = arith.addf %177, %181 : vector<5x64xf32>
    %183 = vector.extract_strided_slice %163 {offsets = [4, 0], sizes = [5, 32], strides = [1, 1]} : vector<9x32xbf16> to vector<5x32xbf16>
    %c4_134 = arith.constant 4 : index
    %c0_135 = arith.constant 0 : index
    %c0_136 = arith.constant 0 : index
    %184 = vector.load %arg5[%c4_134, %c0_135, %c0_136] : memref<5x32x64xbf16, #tpu.memory_space<vmem>>, vector<1x32x64xbf16>
    %185 = vector.shape_cast %184 : vector<1x32x64xbf16> to vector<32x64xbf16>
    %cst_137 = arith.constant dense<0.000000e+00> : vector<5x64xf32>
    %186 = tpu.matmul %183, %185, %cst_137 {dimension_numbers = #tpu.dot_dimension_numbers<[1], [0], [0], [1], [0, 0, 1, 1], [], []>} : vector<5x32xbf16>, vector<32x64xbf16>, vector<5x64xf32> -> vector<5x64xf32>
    %187 = arith.addf %182, %186 : vector<5x64xf32>
    %c0_138 = arith.constant 0 : index
    %c0_139 = arith.constant 0 : index
    %188 = vector.load %arg6[%c0_138, %c0_139] : memref<1x64xf32, #tpu.memory_space<vmem>>, vector<1x64xf32>
    %189 = vector.broadcast %188 : vector<1x64xf32> to vector<5x64xf32>
    %190 = arith.mulf %187, %189 : vector<5x64xf32>
    %c0_140 = arith.constant 0 : index
    %c0_141 = arith.constant 0 : index
    %191 = vector.load %arg7[%c0_140, %c0_141] : memref<1x64xf32, #tpu.memory_space<vmem>>, vector<1x64xf32>
    %192 = vector.broadcast %191 : vector<1x64xf32> to vector<5x64xf32>
    %193 = arith.addf %190, %192 : vector<5x64xf32>
    %cst_142 = arith.constant 0.000000e+00 : f32
    %194 = vector.broadcast %cst_142 : f32 to vector<5x64xf32>
    %195 = arith.maximumf %193, %194 : vector<5x64xf32>
    %196 = arith.truncf %195 : vector<5x64xf32> to vector<5x64xbf16>
    %197 = vector.extract_strided_slice %196 {offsets = [0, 0], sizes = [3, 64], strides = [1, 1]} : vector<5x64xbf16> to vector<3x64xbf16>
    %c0_143 = arith.constant 0 : index
    %c0_144 = arith.constant 0 : index
    %c0_145 = arith.constant 0 : index
    %198 = vector.load %arg8[%c0_143, %c0_144, %c0_145] : memref<3x64x32xbf16, #tpu.memory_space<vmem>>, vector<1x64x32xbf16>
    %199 = vector.shape_cast %198 : vector<1x64x32xbf16> to vector<64x32xbf16>
    %cst_146 = arith.constant dense<0.000000e+00> : vector<3x32xf32>
    %200 = tpu.matmul %197, %199, %cst_146 {dimension_numbers = #tpu.dot_dimension_numbers<[1], [0], [0], [1], [0, 0, 1, 1], [], []>} : vector<3x64xbf16>, vector<64x32xbf16>, vector<3x32xf32> -> vector<3x32xf32>
    %201 = vector.extract_strided_slice %196 {offsets = [1, 0], sizes = [3, 64], strides = [1, 1]} : vector<5x64xbf16> to vector<3x64xbf16>
    %c1_147 = arith.constant 1 : index
    %c0_148 = arith.constant 0 : index
    %c0_149 = arith.constant 0 : index
    %202 = vector.load %arg8[%c1_147, %c0_148, %c0_149] : memref<3x64x32xbf16, #tpu.memory_space<vmem>>, vector<1x64x32xbf16>
    %203 = vector.shape_cast %202 : vector<1x64x32xbf16> to vector<64x32xbf16>
    %cst_150 = arith.constant dense<0.000000e+00> : vector<3x32xf32>
    %204 = tpu.matmul %201, %203, %cst_150 {dimension_numbers = #tpu.dot_dimension_numbers<[1], [0], [0], [1], [0, 0, 1, 1], [], []>} : vector<3x64xbf16>, vector<64x32xbf16>, vector<3x32xf32> -> vector<3x32xf32>
    %205 = arith.addf %200, %204 : vector<3x32xf32>
    %206 = vector.extract_strided_slice %196 {offsets = [2, 0], sizes = [3, 64], strides = [1, 1]} : vector<5x64xbf16> to vector<3x64xbf16>
    %c2_151 = arith.constant 2 : index
    %c0_152 = arith.constant 0 : index
    %c0_153 = arith.constant 0 : index
    %207 = vector.load %arg8[%c2_151, %c0_152, %c0_153] : memref<3x64x32xbf16, #tpu.memory_space<vmem>>, vector<1x64x32xbf16>
    %208 = vector.shape_cast %207 : vector<1x64x32xbf16> to vector<64x32xbf16>
    %cst_154 = arith.constant dense<0.000000e+00> : vector<3x32xf32>
    %209 = tpu.matmul %206, %208, %cst_154 {dimension_numbers = #tpu.dot_dimension_numbers<[1], [0], [0], [1], [0, 0, 1, 1], [], []>} : vector<3x64xbf16>, vector<64x32xbf16>, vector<3x32xf32> -> vector<3x32xf32>
    %210 = arith.addf %205, %209 : vector<3x32xf32>
    %c0_155 = arith.constant 0 : index
    %c0_156 = arith.constant 0 : index
    %211 = vector.load %arg9[%c0_155, %c0_156] : memref<1x32xf32, #tpu.memory_space<vmem>>, vector<1x32xf32>
    %212 = vector.broadcast %211 : vector<1x32xf32> to vector<3x32xf32>
    %213 = arith.mulf %210, %212 : vector<3x32xf32>
    %c0_157 = arith.constant 0 : index
    %c0_158 = arith.constant 0 : index
    %214 = vector.load %arg10[%c0_157, %c0_158] : memref<1x32xf32, #tpu.memory_space<vmem>>, vector<1x32xf32>
    %215 = vector.broadcast %214 : vector<1x32xf32> to vector<3x32xf32>
    %216 = arith.addf %213, %215 : vector<3x32xf32>
    %cst_159 = arith.constant 0.000000e+00 : f32
    %217 = vector.broadcast %cst_159 : f32 to vector<3x32xf32>
    %218 = arith.maximumf %216, %217 : vector<3x32xf32>
    %cst_160 = arith.constant dense<0.000000e+00> : vector<32xf32>
    %219 = vector.multi_reduction <add>, %218, %cst_160 [0] : vector<3x32xf32> to vector<32xf32>
    %220 = vector.shape_cast %219 : vector<32xf32> to vector<1x32xf32>
    %cst_161 = arith.constant 3.000000e+00 : f32
    %221 = vector.broadcast %cst_161 : f32 to vector<1x32xf32>
    %222 = arith.divf %220, %221 : vector<1x32xf32>
    %c1_162 = arith.constant 1 : index
    %c0_163 = arith.constant 0 : index
    %c0_164 = arith.constant 0 : index
    %223 = vector.load %arg11[%c1_162, %c0_163, %c0_164] : memref<2x1x32xf32, #tpu.memory_space<vmem>>, vector<1x1x32xf32>
    %224 = vector.shape_cast %223 : vector<1x1x32xf32> to vector<1x32xf32>
    %225 = vector.shape_cast %222 : vector<1x32xf32> to vector<1x1x32xf32>
    tpu.vector_store %arg11[%c1_162, %c0_163, %c0_164], %225 {strides = array<i32>} : memref<2x1x32xf32, #tpu.memory_space<vmem>>, vector<1x1x32xf32>,
    return
  }
  func.func @transform_0(%arg0: i32) -> (i32, i32, i32) {
    %c0_i32 = arith.constant 0 : i32
    %c0_i32_0 = arith.constant 0 : i32
    %c0_i32_1 = arith.constant 0 : i32
    return %arg0, %c0_i32, %c0_i32_0 : i32, i32, i32
  }
  func.func @transform_1(%arg0: i32) -> (i32, i32, i32) {
    %c0_i32 = arith.constant 0 : i32
    %c0_i32_0 = arith.constant 0 : i32
    %c0_i32_1 = arith.constant 0 : i32
    %c0_i32_2 = arith.constant 0 : i32
    return %c0_i32, %c0_i32_0, %c0_i32_1 : i32, i32, i32
  }
  func.func @transform_2(%arg0: i32) -> (i32, i32) {
    %c0_i32 = arith.constant 0 : i32
    %c0_i32_0 = arith.constant 0 : i32
    %c0_i32_1 = arith.constant 0 : i32
    return %c0_i32, %c0_i32_0 : i32, i32
  }
  func.func @transform_3(%arg0: i32) -> (i32, i32) {
    %c0_i32 = arith.constant 0 : i32
    %c0_i32_0 = arith.constant 0 : i32
    %c0_i32_1 = arith.constant 0 : i32
    return %c0_i32, %c0_i32_0 : i32, i32
  }
  func.func @transform_4(%arg0: i32) -> (i32, i32, i32) {
    %c0_i32 = arith.constant 0 : i32
    %c0_i32_0 = arith.constant 0 : i32
    %c0_i32_1 = arith.constant 0 : i32
    %c0_i32_2 = arith.constant 0 : i32
    return %c0_i32, %c0_i32_0, %c0_i32_1 : i32, i32, i32
  }
  func.func @transform_5(%arg0: i32) -> (i32, i32) {
    %c0_i32 = arith.constant 0 : i32
    %c0_i32_0 = arith.constant 0 : i32
    %c0_i32_1 = arith.constant 0 : i32
    return %c0_i32, %c0_i32_0 : i32, i32
  }
  func.func @transform_6(%arg0: i32) -> (i32, i32) {
    %c0_i32 = arith.constant 0 : i32
    %c0_i32_0 = arith.constant 0 : i32
    %c0_i32_1 = arith.constant 0 : i32
    return %c0_i32, %c0_i32_0 : i32, i32
  }
  func.func @transform_7(%arg0: i32) -> (i32, i32, i32) {
    %c0_i32 = arith.constant 0 : i32
    %c0_i32_0 = arith.constant 0 : i32
    %c0_i32_1 = arith.constant 0 : i32
    %c0_i32_2 = arith.constant 0 : i32
    return %c0_i32, %c0_i32_0, %c0_i32_1 : i32, i32, i32
  }
  func.func @transform_8(%arg0: i32) -> (i32, i32) {
    %c0_i32 = arith.constant 0 : i32
    %c0_i32_0 = arith.constant 0 : i32
    %c0_i32_1 = arith.constant 0 : i32
    return %c0_i32, %c0_i32_0 : i32, i32
  }
  func.func @transform_9(%arg0: i32) -> (i32, i32) {
    %c0_i32 = arith.constant 0 : i32
    %c0_i32_0 = arith.constant 0 : i32
    %c0_i32_1 = arith.constant 0 : i32
    return %c0_i32, %c0_i32_0 : i32, i32
  }
  func.func @transform_10(%arg0: i32) -> (i32, i32, i32) {
    %c0_i32 = arith.constant 0 : i32
    %c0_i32_0 = arith.constant 0 : i32
    %c0_i32_1 = arith.constant 0 : i32
    return %arg0, %c0_i32, %c0_i32_0 : i32, i32, i32
  }
}

module attributes {stable_mosaic.version = 11 : i64} {
  func.func @_lstm_kernel(%arg0: memref<2x4xf32, #tpu.memory_space<vmem>>, %arg1: memref<4x512xbf16, #tpu.memory_space<vmem>>, %arg2: memref<128x512xbf16, #tpu.memory_space<vmem>>, %arg3: memref<1x512xf32, #tpu.memory_space<vmem>>, %arg4: memref<2x128xf32, #tpu.memory_space<vmem>>, %arg5: memref<2x512xf32, #tpu.memory_space<vmem>>, %arg6: memref<1x128xf32, #tpu.memory_space<vmem>>, %arg7: memref<1x128xf32, #tpu.memory_space<vmem>>) attributes {dimension_semantics = [], scalar_prefetch = 0 : i64, scratch_operands = 3 : i64, tpu.core_type = #tpu.core_type<tc>} {
    %c0 = arith.constant 0 : index
    %c0_0 = arith.constant 0 : index
    %0 = vector.load %arg0[%c0, %c0_0] : memref<2x4xf32, #tpu.memory_space<vmem>>, vector<2x4xf32>
    %1 = arith.truncf %0 : vector<2x4xf32> to vector<2x4xbf16>
    %c0_1 = arith.constant 0 : index
    %c0_2 = arith.constant 0 : index
    %2 = vector.load %arg1[%c0_1, %c0_2] : memref<4x512xbf16, #tpu.memory_space<vmem>>, vector<4x512xbf16>
    %cst = arith.constant dense<0.000000e+00> : vector<2x512xf32>
    %3 = tpu.matmul %1, %2, %cst {dimension_numbers = #tpu.dot_dimension_numbers<[1], [0], [0], [1], [0, 0, 1, 1], [], []>} : vector<2x4xbf16>, vector<4x512xbf16>, vector<2x512xf32> -> vector<2x512xf32>
    %c0_3 = arith.constant 0 : index
    %c0_4 = arith.constant 0 : index
    %4 = vector.load %arg3[%c0_3, %c0_4] : memref<1x512xf32, #tpu.memory_space<vmem>>, vector<1x512xf32>
    %5 = vector.broadcast %4 : vector<1x512xf32> to vector<2x512xf32>
    %6 = arith.addf %3, %5 : vector<2x512xf32>
    %c0_5 = arith.constant 0 : index
    %c0_6 = arith.constant 0 : index
    %7 = vector.load %arg5[%c0_5, %c0_6] : memref<2x512xf32, #tpu.memory_space<vmem>>, vector<2x512xf32>
    tpu.vector_store %arg5[%c0_5, %c0_6], %6 {strides = array<i32>} : memref<2x512xf32, #tpu.memory_space<vmem>>, vector<2x512xf32>,
    %cst_7 = arith.constant 0.000000e+00 : f32
    %8 = vector.broadcast %cst_7 : f32 to vector<1x128xf32>
    %c0_8 = arith.constant 0 : index
    %c0_9 = arith.constant 0 : index
    %9 = vector.load %arg6[%c0_8, %c0_9] : memref<1x128xf32, #tpu.memory_space<vmem>>, vector<1x128xf32>
    tpu.vector_store %arg6[%c0_8, %c0_9], %8 {strides = array<i32>} : memref<1x128xf32, #tpu.memory_space<vmem>>, vector<1x128xf32>,
    %cst_10 = arith.constant 0.000000e+00 : f32
    %10 = vector.broadcast %cst_10 : f32 to vector<1x128xf32>
    %c0_11 = arith.constant 0 : index
    %c0_12 = arith.constant 0 : index
    %11 = vector.load %arg7[%c0_11, %c0_12] : memref<1x128xf32, #tpu.memory_space<vmem>>, vector<1x128xf32>
    tpu.vector_store %arg7[%c0_11, %c0_12], %10 {strides = array<i32>} : memref<1x128xf32, #tpu.memory_space<vmem>>, vector<1x128xf32>,
    %c0_i32 = arith.constant 0 : i32
    %12 = arith.index_cast %c0_i32 : i32 to index
    %c0_13 = arith.constant 0 : index
    %13 = vector.load %arg5[%12, %c0_13] : memref<2x512xf32, #tpu.memory_space<vmem>>, vector<1x512xf32>
    %c0_14 = arith.constant 0 : index
    %c0_15 = arith.constant 0 : index
    %14 = vector.load %arg6[%c0_14, %c0_15] : memref<1x128xf32, #tpu.memory_space<vmem>>, vector<1x128xf32>
    %15 = arith.truncf %14 : vector<1x128xf32> to vector<1x128xbf16>
    %c0_16 = arith.constant 0 : index
    %c0_17 = arith.constant 0 : index
    %16 = vector.load %arg2[%c0_16, %c0_17] : memref<128x512xbf16, #tpu.memory_space<vmem>>, vector<128x512xbf16>
    %cst_18 = arith.constant dense<0.000000e+00> : vector<1x512xf32>
    %17 = tpu.matmul %15, %16, %cst_18 {dimension_numbers = #tpu.dot_dimension_numbers<[1], [0], [0], [1], [0, 0, 1, 1], [], []>} : vector<1x128xbf16>, vector<128x512xbf16>, vector<1x512xf32> -> vector<1x512xf32>
    %18 = arith.addf %13, %17 : vector<1x512xf32>
    %19 = vector.extract_strided_slice %18 {offsets = [0, 0], sizes = [1, 128], strides = [1, 1]} : vector<1x512xf32> to vector<1x128xf32>
    %20 = arith.negf %19 : vector<1x128xf32>
    %21 = math.exp %20 : vector<1x128xf32>
    %cst_19 = arith.constant 1.000000e+00 : f32
    %22 = vector.broadcast %cst_19 : f32 to vector<1x128xf32>
    %23 = arith.addf %22, %21 : vector<1x128xf32>
    %24 = arith.divf %22, %23 : vector<1x128xf32>
    %25 = vector.extract_strided_slice %18 {offsets = [0, 128], sizes = [1, 128], strides = [1, 1]} : vector<1x512xf32> to vector<1x128xf32>
    %26 = arith.negf %25 : vector<1x128xf32>
    %27 = math.exp %26 : vector<1x128xf32>
    %cst_20 = arith.constant 1.000000e+00 : f32
    %28 = vector.broadcast %cst_20 : f32 to vector<1x128xf32>
    %29 = arith.addf %28, %27 : vector<1x128xf32>
    %30 = arith.divf %28, %29 : vector<1x128xf32>
    %31 = vector.extract_strided_slice %18 {offsets = [0, 256], sizes = [1, 128], strides = [1, 1]} : vector<1x512xf32> to vector<1x128xf32>
    %32 = math.tanh %31 : vector<1x128xf32>
    %33 = vector.extract_strided_slice %18 {offsets = [0, 384], sizes = [1, 128], strides = [1, 1]} : vector<1x512xf32> to vector<1x128xf32>
    %34 = arith.negf %33 : vector<1x128xf32>
    %35 = math.exp %34 : vector<1x128xf32>
    %cst_21 = arith.constant 1.000000e+00 : f32
    %36 = vector.broadcast %cst_21 : f32 to vector<1x128xf32>
    %37 = arith.addf %36, %35 : vector<1x128xf32>
    %38 = arith.divf %36, %37 : vector<1x128xf32>
    %c0_22 = arith.constant 0 : index
    %c0_23 = arith.constant 0 : index
    %39 = vector.load %arg7[%c0_22, %c0_23] : memref<1x128xf32, #tpu.memory_space<vmem>>, vector<1x128xf32>
    %40 = arith.mulf %30, %39 : vector<1x128xf32>
    %41 = arith.mulf %24, %32 : vector<1x128xf32>
    %42 = arith.addf %40, %41 : vector<1x128xf32>
    %c0_24 = arith.constant 0 : index
    %c0_25 = arith.constant 0 : index
    %43 = vector.load %arg7[%c0_24, %c0_25] : memref<1x128xf32, #tpu.memory_space<vmem>>, vector<1x128xf32>
    tpu.vector_store %arg7[%c0_24, %c0_25], %42 {strides = array<i32>} : memref<1x128xf32, #tpu.memory_space<vmem>>, vector<1x128xf32>,
    %c0_26 = arith.constant 0 : index
    %c0_27 = arith.constant 0 : index
    %44 = vector.load %arg7[%c0_26, %c0_27] : memref<1x128xf32, #tpu.memory_space<vmem>>, vector<1x128xf32>
    %45 = math.tanh %44 : vector<1x128xf32>
    %46 = arith.mulf %38, %45 : vector<1x128xf32>
    %c0_28 = arith.constant 0 : index
    %c0_29 = arith.constant 0 : index
    %47 = vector.load %arg6[%c0_28, %c0_29] : memref<1x128xf32, #tpu.memory_space<vmem>>, vector<1x128xf32>
    tpu.vector_store %arg6[%c0_28, %c0_29], %46 {strides = array<i32>} : memref<1x128xf32, #tpu.memory_space<vmem>>, vector<1x128xf32>,
    %c0_30 = arith.constant 0 : index
    %c0_31 = arith.constant 0 : index
    %48 = vector.load %arg6[%c0_30, %c0_31] : memref<1x128xf32, #tpu.memory_space<vmem>>, vector<1x128xf32>
    %49 = arith.index_cast %c0_i32 : i32 to index
    %c0_32 = arith.constant 0 : index
    %50 = vector.load %arg4[%49, %c0_32] : memref<2x128xf32, #tpu.memory_space<vmem>>, vector<1x128xf32>
    tpu.vector_store %arg4[%49, %c0_32], %48 {strides = array<i32>} : memref<2x128xf32, #tpu.memory_space<vmem>>, vector<1x128xf32>,
    %c1_i32 = arith.constant 1 : i32
    %51 = arith.index_cast %c1_i32 : i32 to index
    %c0_33 = arith.constant 0 : index
    %52 = vector.load %arg5[%51, %c0_33] : memref<2x512xf32, #tpu.memory_space<vmem>>, vector<1x512xf32>
    %c0_34 = arith.constant 0 : index
    %c0_35 = arith.constant 0 : index
    %53 = vector.load %arg6[%c0_34, %c0_35] : memref<1x128xf32, #tpu.memory_space<vmem>>, vector<1x128xf32>
    %54 = arith.truncf %53 : vector<1x128xf32> to vector<1x128xbf16>
    %c0_36 = arith.constant 0 : index
    %c0_37 = arith.constant 0 : index
    %55 = vector.load %arg2[%c0_36, %c0_37] : memref<128x512xbf16, #tpu.memory_space<vmem>>, vector<128x512xbf16>
    %cst_38 = arith.constant dense<0.000000e+00> : vector<1x512xf32>
    %56 = tpu.matmul %54, %55, %cst_38 {dimension_numbers = #tpu.dot_dimension_numbers<[1], [0], [0], [1], [0, 0, 1, 1], [], []>} : vector<1x128xbf16>, vector<128x512xbf16>, vector<1x512xf32> -> vector<1x512xf32>
    %57 = arith.addf %52, %56 : vector<1x512xf32>
    %58 = vector.extract_strided_slice %57 {offsets = [0, 0], sizes = [1, 128], strides = [1, 1]} : vector<1x512xf32> to vector<1x128xf32>
    %59 = arith.negf %58 : vector<1x128xf32>
    %60 = math.exp %59 : vector<1x128xf32>
    %cst_39 = arith.constant 1.000000e+00 : f32
    %61 = vector.broadcast %cst_39 : f32 to vector<1x128xf32>
    %62 = arith.addf %61, %60 : vector<1x128xf32>
    %63 = arith.divf %61, %62 : vector<1x128xf32>
    %64 = vector.extract_strided_slice %57 {offsets = [0, 128], sizes = [1, 128], strides = [1, 1]} : vector<1x512xf32> to vector<1x128xf32>
    %65 = arith.negf %64 : vector<1x128xf32>
    %66 = math.exp %65 : vector<1x128xf32>
    %cst_40 = arith.constant 1.000000e+00 : f32
    %67 = vector.broadcast %cst_40 : f32 to vector<1x128xf32>
    %68 = arith.addf %67, %66 : vector<1x128xf32>
    %69 = arith.divf %67, %68 : vector<1x128xf32>
    %70 = vector.extract_strided_slice %57 {offsets = [0, 256], sizes = [1, 128], strides = [1, 1]} : vector<1x512xf32> to vector<1x128xf32>
    %71 = math.tanh %70 : vector<1x128xf32>
    %72 = vector.extract_strided_slice %57 {offsets = [0, 384], sizes = [1, 128], strides = [1, 1]} : vector<1x512xf32> to vector<1x128xf32>
    %73 = arith.negf %72 : vector<1x128xf32>
    %74 = math.exp %73 : vector<1x128xf32>
    %cst_41 = arith.constant 1.000000e+00 : f32
    %75 = vector.broadcast %cst_41 : f32 to vector<1x128xf32>
    %76 = arith.addf %75, %74 : vector<1x128xf32>
    %77 = arith.divf %75, %76 : vector<1x128xf32>
    %c0_42 = arith.constant 0 : index
    %c0_43 = arith.constant 0 : index
    %78 = vector.load %arg7[%c0_42, %c0_43] : memref<1x128xf32, #tpu.memory_space<vmem>>, vector<1x128xf32>
    %79 = arith.mulf %69, %78 : vector<1x128xf32>
    %80 = arith.mulf %63, %71 : vector<1x128xf32>
    %81 = arith.addf %79, %80 : vector<1x128xf32>
    %c0_44 = arith.constant 0 : index
    %c0_45 = arith.constant 0 : index
    %82 = vector.load %arg7[%c0_44, %c0_45] : memref<1x128xf32, #tpu.memory_space<vmem>>, vector<1x128xf32>
    tpu.vector_store %arg7[%c0_44, %c0_45], %81 {strides = array<i32>} : memref<1x128xf32, #tpu.memory_space<vmem>>, vector<1x128xf32>,
    %c0_46 = arith.constant 0 : index
    %c0_47 = arith.constant 0 : index
    %83 = vector.load %arg7[%c0_46, %c0_47] : memref<1x128xf32, #tpu.memory_space<vmem>>, vector<1x128xf32>
    %84 = math.tanh %83 : vector<1x128xf32>
    %85 = arith.mulf %77, %84 : vector<1x128xf32>
    %c0_48 = arith.constant 0 : index
    %c0_49 = arith.constant 0 : index
    %86 = vector.load %arg6[%c0_48, %c0_49] : memref<1x128xf32, #tpu.memory_space<vmem>>, vector<1x128xf32>
    tpu.vector_store %arg6[%c0_48, %c0_49], %85 {strides = array<i32>} : memref<1x128xf32, #tpu.memory_space<vmem>>, vector<1x128xf32>,
    %c0_50 = arith.constant 0 : index
    %c0_51 = arith.constant 0 : index
    %87 = vector.load %arg6[%c0_50, %c0_51] : memref<1x128xf32, #tpu.memory_space<vmem>>, vector<1x128xf32>
    %88 = arith.index_cast %c1_i32 : i32 to index
    %c0_52 = arith.constant 0 : index
    %89 = vector.load %arg4[%88, %c0_52] : memref<2x128xf32, #tpu.memory_space<vmem>>, vector<1x128xf32>
    tpu.vector_store %arg4[%88, %c0_52], %87 {strides = array<i32>} : memref<2x128xf32, #tpu.memory_space<vmem>>, vector<1x128xf32>,
    %c2_i32 = arith.constant 2 : i32
    return
  }
}

</mosaic_0001>

<bundles_post_ra>
// kernel: lstmfcn_forward.2
= control target key start
LH: loop header
LB: loop body
LE: loop exit
PB: predicated region body
PF: predicated region fallthrough
CT: control target
= control target key end

     0   :  { %9 = vsyncpa [#allocation6], 0  ;;  %s1204_s18 = smov [#allocation5]   ;;  %s1205_s20 = smov 256   ;;  %s1325_s0 = inlined_call_operand.vmem [shape: f32[2,4], index: 0, kind: input, shape index: {}]   ;;  %s1326_s1 = inlined_call_operand.vmem [shape: bf16[4,512], index: 1, kind: input, shape index: {}]   ;;  %s1327_s2 = inlined_call_operand.hbm [shape: bf16[128,512], index: 2, kind: input, shape index: {}]   ;;  %s1328_s3 = inlined_call_operand.vmem [shape: f32[1,512], index: 3, kind: input, shape index: {}]   ;;  %s1329_s4 = inlined_call_operand.vmem [shape: f32[2,128], index: 4, kind: output, shape index: {}]  }
   0x1   :  { %s18_s17 = sshll.u32 %s1327_s2, 4  ;;  %s20_s19 = sshll.u32 %s1204_s18, 4  ;;  %s19_s17 = int_to_ptr.hbm [resolvable:$true] %s18_s17  ;;  %s21_s19 = int_to_ptr.vmem [resolvable:$true] %s20_s19 }
   0x2   :  { %s1206_s21 = smov 16  }
   0x3   :  { %26 = dma.hbm_to_vmem [thread:$0]  %s19_s17, 4096, %s21_s19, [#allocation6], %s1205_s20, %s1205_s20, %s1206_s21  }
   0x4   :  { %1202 = dma.done.wait [#allocation6], 4096  }
   0x5   :  { %1203 = vsyncadd [#allocation6], 4294963200  ;;  %v36_v0 = vld [vmem:[%s1326_s1] sm:$0xff]  ;;  %vm57_vm0 = vcmask 1041408   ;;  %v930_v1 = vld [vmem:[#allocation5 + $0xe0] sm:$0xf] }
   0x6   :  { %48 = vst [vmem:[#allocation1] ss:$4 sm:$0xff] %v36_v0  ;;  %v1108_v2 = vld [vmem:[#allocation5 + $0xec] sm:$0xf0]  ;;  %v1106_v3 = vld [vmem:[#allocation5 + $0xe4] sm:$0xf] }
   0x7   :  { %v932_v4 = vld [vmem:[#allocation5 + $0xf0] sm:$0xf0]  ;;  %v938_v5 = vld [vmem:[#allocation5 + $0xe8] sm:$0xf]  ;;  %v1109_v6 = vld [vmem:[#allocation5 + $0xf4] sm:$0xf0]  ;;  %v931_v11 = vor.u32 %v1108_v2, %v930_v1 }
   0x8   :  { %v1107_v7 = vld [vmem:[#allocation5 + $0xec] sm:$0xf]  ;;  %v940_v8 = vld [vmem:[#allocation5 + $0xf8] sm:$0xf0]  ;;  %v914_v9 = vld [vmem:[#allocation5 + $0xc0] sm:$0xf]  ;;  %v935_v17 = vor.u32 %v1106_v3, %v932_v4  ;;  %v939_v24 = vor.u32 %v1109_v6, %v938_v5 }
   0x9   :  { %v1104_v10 = vld [vmem:[#allocation5 + $0xcc] sm:$0xf0]  ;;  %v1102_v12 = vld [vmem:[#allocation5 + $0xc4] sm:$0xf]  ;;  %v916_v13 = vld [vmem:[#allocation5 + $0xd0] sm:$0xf0]  ;;  %v943_v25 = vor.u32 %v1107_v7, %v940_v8 }
   0xa   :  { %v34_v14 = vld [vmem:[%s1325_s0] sm:$0x3]  ;;  %v922_v18 = vld [vmem:[#allocation5 + $0xc8] sm:$0xf]  ;;  %v1105_v19 = vld [vmem:[#allocation5 + $0xd4] sm:$0xf0]  ;;  %v915_v31 = vor.u32 %v1104_v10, %v914_v9  ;;  %v919_v32 = vor.u32 %v1102_v12, %v916_v13 }
   0xb   :  { %v1103_v20 = vld [vmem:[#allocation5 + $0xcc] sm:$0xf]  ;;  %v924_v28 = vld [vmem:[#allocation5 + $0xd8] sm:$0xf0]  ;;  %v35_v29 = vpack.c.bf16 %v34_v14, %v34_v14  ;;  %vm53_vm1 = vcmask 31744   ;;  %v923_v35 = vor.u32 %v1105_v19, %v922_v18  ;;  %v1207_v13 = vmov 0.0  }
   0xc   :  { %v898_v33 = vld [vmem:[#allocation5 + $0xa0] sm:$0xf]  ;;  %v1100_v34 = vld [vmem:[#allocation5 + $0xac] sm:$0xf0]  ;;  %v927_v36 = vor.u32 %v1103_v20, %v924_v28  ;;  %v1098_v37 = vld [vmem:[#allocation5 + $0xa4] sm:$0xf] }
   0xd   :  { %v49_v15 = vld.sshfl [vmem:[#allocation1] sm:$0xff pattern:$0x73625140]  ;;  %v50_v16 = vld.sshfl [vmem:[#allocation1 + $0x8] sm:$0xff pattern:$0x73625140]  ;;  %v899_v43 = vor.u32 %v1100_v34, %v898_v33 }
   0xe   :  { %v58_v21 = vsel %vm57_vm0, %v49_v15, 0  ;;  %v60_v22 = vsel %vm57_vm0, %v50_v16, 0  ;;  %v51_v23 = vld.sshfl [vmem:[#allocation1 + $0x10] sm:$0xff pattern:$0x73625140]  ;;  %vm126_vm2 = vcmask 1045508  }
   0xf   :  { %73 = vmatpush.bf16.msra.mxu0 %v58_v21  ;;  %86 = vmatpush.bf16.msra.mxu1 %v60_v22  ;;  %v62_v26 = vsel %vm57_vm0, %v51_v23, 0  ;;  %v52_v27 = vld.sshfl [vmem:[#allocation1 + $0x18] sm:$0xff pattern:$0x73625140]  ;;  %v900_v38 = vld [vmem:[#allocation5 + $0xb0] sm:$0xf0] }
  0x10   :  { %99 = vmatpush.bf16.msra.mxu2 %v62_v26  ;;  %v64_v30 = vsel %vm57_vm0, %v52_v27, 0  ;;  %v906_v39 = vld [vmem:[#allocation5 + $0xa8] sm:$0xf]  ;;  %v1101_v40 = vld [vmem:[#allocation5 + $0xb4] sm:$0xf0]  ;;  %v903_v44 = vor.u32 %v1098_v37, %v900_v38  ;;  %vm128_vm3 = vcmask 1043456  }
  0x11   :  { %112 = vmatpush.bf16.msra.mxu3 %v64_v30  ;;  %v1099_v41 = vld [vmem:[#allocation5 + $0xac] sm:$0xf]  ;;  %v908_v42 = vld [vmem:[#allocation5 + $0xb8] sm:$0xf0]  ;;  %v882_v45 = vld [vmem:[#allocation5 + $0x80] sm:$0xf]  ;;  %v907_v47 = vor.u32 %v1101_v40, %v906_v39 }
  0x12   :  { %813 = vmatmul.msk.bf16.vlgmr.msra.gmra.mxu1 %vm53_vm1, %v35_v29  ;;  %v1096_v46 = vld [vmem:[#allocation5 + $0x8c] sm:$0xf0]  ;;  %812 = vmatmul.msk.bf16.vlgmr.msra.gmra.mxu0 %vm53_vm1, %v35_v29  ;;  %v911_v48 = vor.u32 %v1099_v41, %v908_v42  ;;  %v1094_v49 = vld [vmem:[#allocation5 + $0x84] sm:$0xf]  ;;  %v884_v50 = vld [vmem:[#allocation5 + $0x90] sm:$0xf0] }
  0x13   :  { %329 = vmatpush.bf16.msrb.mxu0 %v931_v11  ;;  %342 = vmatpush.bf16.msrb.mxu1 %v935_v17  ;;  %v890_v51 = vld [vmem:[#allocation5 + $0x88] sm:$0xf]  ;;  %v1097_v52 = vld [vmem:[#allocation5 + $0x94] sm:$0xf0]  ;;  %v1095_v53 = vld [vmem:[#allocation5 + $0x8c] sm:$0xf]  ;;  %v883_v55 = vor.u32 %v1096_v46, %v882_v45  ;;  %v887_v56 = vor.u32 %v1094_v49, %v884_v50 }
  0x14   :  { %355 = vmatpush.bf16.msrb.mxu2 %v939_v24  ;;  %815 = vmatmul.msk.bf16.vlgmr.msra.gmra.mxu3 %vm53_vm1, %v35_v29  ;;  %v892_v54 = vld [vmem:[#allocation5 + $0x98] sm:$0xf0]  ;;  %v866_v57 = vld [vmem:[#allocation5 + $0x60] sm:$0xf]  ;;  %v1092_v58 = vld [vmem:[#allocation5 + $0x6c] sm:$0xf0]  ;;  %v891_v59 = vor.u32 %v1097_v52, %v890_v51 }
  0x15   :  { %368 = vmatpush.bf16.msrb.mxu3 %v943_v25  ;;  %814 = vmatmul.msk.bf16.vlgmr.msra.gmra.mxu2 %vm53_vm1, %v35_v29  ;;  %v895_v60 = vor.u32 %v1095_v53, %v892_v54  ;;  %v1090_v61 = vld [vmem:[#allocation5 + $0x64] sm:$0xf]  ;;  %v868_v62 = vld [vmem:[#allocation5 + $0x70] sm:$0xf0]  ;;  %v874_v63 = vld [vmem:[#allocation5 + $0x68] sm:$0xf]  ;;  %v867_v3 = vor.u32 %v1092_v58, %v866_v57 }
  0x16   :  { %v1093_v0 = vld [vmem:[#allocation5 + $0x74] sm:$0xf0]  ;;  %v1091_v1 = vld [vmem:[#allocation5 + $0x6c] sm:$0xf]  ;;  %v876_v2 = vld [vmem:[#allocation5 + $0x78] sm:$0xf0]  ;;  %v871_v5 = vor.u32 %v1090_v61, %v868_v62 }
  0x17   :  { %330 = vmatpush.bf16.msrb.mxu0 %v915_v31  ;;  %343 = vmatpush.bf16.msrb.mxu1 %v919_v32  ;;  %v850_v4 = vld [vmem:[#allocation5 + $0x40] sm:$0xf]  ;;  %v1088_v6 = vld [vmem:[#allocation5 + $0x4c] sm:$0xf0]  ;;  %v1086_v7 = vld [vmem:[#allocation5 + $0x44] sm:$0xf]  ;;  %v875_v9 = vor.u32 %v1093_v0, %v874_v63  ;;  %v879_v10 = vor.u32 %v1091_v1, %v876_v2 }
  0x18   :  { %356 = vmatpush.bf16.msrb.mxu2 %v923_v35  ;;  %v852_v8 = vld [vmem:[#allocation5 + $0x50] sm:$0xf0]  ;;  %v858_v11 = vld [vmem:[#allocation5 + $0x48] sm:$0xf]  ;;  %v1089_v12 = vld [vmem:[#allocation5 + $0x54] sm:$0xf0]  ;;  %v851_v16 = vor.u32 %v1088_v6, %v850_v4 }
  0x19   :  { %369 = vmatpush.bf16.msrb.mxu3 %v927_v36  ;;  %132 = vst [vmem:[#allocation3] sm:$0x1] %v1207_v13  ;;  %v1087_v14 = vld [vmem:[#allocation5 + $0x4c] sm:$0xf]  ;;  %v860_v15 = vld [vmem:[#allocation5 + $0x58] sm:$0xf0]  ;;  %v855_v17 = vor.u32 %v1086_v7, %v852_v8  ;;  %v859_v20 = vor.u32 %v1089_v12, %v858_v11 }
  0x1a   :  { %133 = vst [vmem:[#allocation4] sm:$0x1] %v1207_v13  ;;  %v834_v18 = vld [vmem:[#allocation5 + $0x20] sm:$0xf]  ;;  %v1084_v19 = vld [vmem:[#allocation5 + $0x2c] sm:$0xf0]  ;;  %v863_v21 = vor.u32 %v1087_v14, %v860_v15 }
  0x1b   :  { %331 = vmatpush.bf16.msrb.mxu0 %v899_v43  ;;  %344 = vmatpush.bf16.msrb.mxu1 %v903_v44  ;;  %v1082_v22 = vld [vmem:[#allocation5 + $0x24] sm:$0xf]  ;;  %v836_v23 = vld [vmem:[#allocation5 + $0x30] sm:$0xf0]  ;;  %v842_v24 = vld [vmem:[#allocation5 + $0x28] sm:$0xf]  ;;  %v835_v28 = vor.u32 %v1084_v19, %v834_v18 }
  0x1c   :  { %357 = vmatpush.bf16.msrb.mxu2 %v907_v47  ;;  %v1085_v25 = vld [vmem:[#allocation5 + $0x34] sm:$0xf0]  ;;  %v1083_v26 = vld [vmem:[#allocation5 + $0x2c] sm:$0xf]  ;;  %v844_v27 = vld [vmem:[#allocation5 + $0x38] sm:$0xf0]  ;;  %v839_v29 = vor.u32 %v1082_v22, %v836_v23 }
  0x1d   :  { %370 = vmatpush.bf16.msrb.mxu3 %v911_v48  ;;  %v818_v30 = vld [vmem:[#allocation5] sm:$0xf]  ;;  %v1080_v31 = vld [vmem:[#allocation5 + $0xc] sm:$0xf0]  ;;  %v843_v32 = vor.u32 %v1085_v25, %v842_v24  ;;  %v847_v33 = vor.u32 %v1083_v26, %v844_v27  ;;  %v1078_v34 = vld [vmem:[#allocation5 + $0x4] sm:$0xf] }
  0x1e   :  { %v820_v35 = vld [vmem:[#allocation5 + $0x10] sm:$0xf0]  ;;  %v826_v36 = vld [vmem:[#allocation5 + $0x8] sm:$0xf]  ;;  %v1081_v37 = vld [vmem:[#allocation5 + $0x14] sm:$0xf0]  ;;  %v819_v40 = vor.u32 %v1080_v31, %v818_v30 }
  0x1f   :  { %332 = vmatpush.bf16.msrb.mxu0 %v883_v55  ;;  %345 = vmatpush.bf16.msrb.mxu1 %v887_v56  ;;  %v1079_v38 = vld [vmem:[#allocation5 + $0xc] sm:$0xf]  ;;  %v828_v39 = vld [vmem:[#allocation5 + $0x18] sm:$0xf0]  ;;  %v823_v42 = vor.u32 %v1078_v34, %v820_v35  ;;  %v827_v43 = vor.u32 %v1081_v37, %v826_v36  ;;  %vm388_vm4 = vcmask 1040384   ;;  %vm390_vm5 = vcmask 1042434  }
  0x20   :  { %358 = vmatpush.bf16.msrb.mxu2 %v891_v59  ;;  %v135_v41 = vld [vmem:[#allocation3] sm:$0x1]  ;;  %v831_v44 = vor.u32 %v1079_v38, %v828_v39  ;;  %v37_v46 = vld [vmem:[%s1328_s3] sm:$0xf]  ;;  %v1061_v18 = vld [vmem:[#allocation5 + $0xe0] sm:$0xf] }
  0x21   :  { %371 = vmatpush.bf16.msrb.mxu3 %v895_v60  ;;  %v136_v45 = vpack.c.bf16 %v135_v41, %v135_v41  ;;  %v40_v47 = vperm.slane %v37_v46, 1  ;;  %v39_v50 = vperm.slane %v37_v46, 0  ;;  %v41_v52 = vperm.slane %v37_v46, 2  ;;  %v1140_v19 = vld [vmem:[#allocation5 + $0xec] sm:$0xf0] }
  0x22   :  { %v42_v53 = vperm.slane %v37_v46, 3  ;;  %v1062_v22 = vor.u32 %v1140_v19, %v1061_v18  ;;  %v1063_v23 = vld [vmem:[#allocation5 + $0xf0] sm:$0xf0]  ;;  %v1069_v24 = vld [vmem:[#allocation5 + $0xe8] sm:$0xf] }
  0x23   :  { %333 = vmatpush.bf16.msrb.mxu0 %v867_v3  ;;  %346 = vmatpush.bf16.msrb.mxu1 %v871_v5  ;;  %v1141_v25 = vld [vmem:[#allocation5 + $0xf4] sm:$0xf0]  ;;  %v1045_v36 = vld [vmem:[#allocation5 + $0xc0] sm:$0xf]  ;;  %v1136_v37 = vld [vmem:[#allocation5 + $0xcc] sm:$0xf0] }
  0x24   :  { %359 = vmatpush.bf16.msrb.mxu2 %v875_v9  ;;  %v1070_v27 = vor.u32 %v1141_v25, %v1069_v24  ;;  %v1134_v38 = vld [vmem:[#allocation5 + $0xc4] sm:$0xf]  ;;  %v1047_v41 = vld [vmem:[#allocation5 + $0xd0] sm:$0xf0]  ;;  %v1125_v24 = vld [vmem:[#allocation5 + $0x74] sm:$0xf0] }
  0x25   :  { %372 = vmatpush.bf16.msrb.mxu3 %v879_v10  ;;  %v999_v18 = vld [vmem:[#allocation5 + $0x70] sm:$0xf0] }
  0x27   :  { %334 = vmatpush.bf16.msrb.mxu0 %v851_v16  ;;  %347 = vmatpush.bf16.msrb.mxu1 %v855_v17 }
  0x28   :  { %360 = vmatpush.bf16.msrb.mxu2 %v859_v20  ;;  %v1138_v20 = vld [vmem:[#allocation5 + $0xe4] sm:$0xf] }
  0x29   :  { %373 = vmatpush.bf16.msrb.mxu3 %v863_v21  ;;  %v1066_v26 = vor.u32 %v1138_v20, %v1063_v23  ;;  %v1005_v23 = vld [vmem:[#allocation5 + $0x68] sm:$0xf] }
  0x2b   :  { %335 = vmatpush.bf16.msrb.mxu0 %v835_v28  ;;  %348 = vmatpush.bf16.msrb.mxu1 %v839_v29  ;;  %v1139_v28 = vld [vmem:[#allocation5 + $0xec] sm:$0xf]  ;;  %v1071_v29 = vld [vmem:[#allocation5 + $0xf8] sm:$0xf0] }
  0x2c   :  { %361 = vmatpush.bf16.msrb.mxu2 %v843_v32  ;;  %v1074_v35 = vor.u32 %v1139_v28, %v1071_v29  ;;  %v1123_v28 = vld [vmem:[#allocation5 + $0x6c] sm:$0xf]  ;;  %v1007_v29 = vld [vmem:[#allocation5 + $0x78] sm:$0xf0] }
  0x2d   :  { %374 = vmatpush.bf16.msrb.mxu3 %v847_v33 }
  0x2f   :  { %336 = vmatpush.bf16.msrb.mxu0 %v819_v40  ;;  %349 = vmatpush.bf16.msrb.mxu1 %v823_v42  ;;  %v1046_v40 = vor.u32 %v1136_v37, %v1045_v36  ;;  %v1050_v42 = vor.u32 %v1134_v38, %v1047_v41  ;;  %v983_v36 = vld [vmem:[#allocation5 + $0x50] sm:$0xf0]  ;;  %v989_v37 = vld [vmem:[#allocation5 + $0x48] sm:$0xf] }
  0x30   :  { %362 = vmatpush.bf16.msrb.mxu2 %v827_v43  ;;  %v1053_v43 = vld [vmem:[#allocation5 + $0xc8] sm:$0xf] }
  0x31   :  { %375 = vmatpush.bf16.msrb.mxu3 %v831_v44  ;;  %v1137_v44 = vld [vmem:[#allocation5 + $0xd4] sm:$0xf0] }
  0x32   :  { %337 = vmatmul.bf16.vlgmr.msrb.gmra.mxu0 %v136_v45  ;;  %350 = vmatmul.bf16.vlgmr.msrb.gmra.mxu1 %v136_v45 }
  0x33   :  { %363 = vmatmul.bf16.vlgmr.msrb.gmra.mxu2 %v136_v45  ;;  %667 = vmatpush.bf16.msra.mxu0 %v1062_v22 }
  0x34   :  { %376 = vmatmul.bf16.vlgmr.msrb.gmra.mxu3 %v136_v45  ;;  %680 = vmatpush.bf16.msra.mxu1 %v1066_v26  ;;  %v1135_v45 = vld [vmem:[#allocation5 + $0xcc] sm:$0xf] }
  0x35   :  { %693 = vmatpush.bf16.msra.mxu2 %v1070_v27  ;;  %706 = vmatpush.bf16.msra.mxu3 %v1074_v35  ;;  %v1006_v27 = vor.u32 %v1125_v24, %v1005_v23  ;;  %v460_v24 = vld [vmem:[#allocation4] sm:$0x1] }
  0x37   :  { %668 = vmatpush.bf16.msra.mxu0 %v1046_v40 }
  0x38   :  { %681 = vmatpush.bf16.msra.mxu1 %v1050_v42  ;;  %v1121_v42 = vld [vmem:[#allocation5 + $0x54] sm:$0xf0] }
  0x8f   :  { %v88_v48 = vpop.f32.mrf.mxu1  ;;  %v75_v51 = vpop.f32.mrf.mxu0 }
  0x90   :  { %v89_v49 = vadd.f32 %v88_v48, %v40_v47  ;;  %v76_v56 = vadd.f32 %v75_v51, %v39_v50  ;;  %v1054_v47 = vor.u32 %v1137_v44, %v1053_v43  ;;  %v1055_v48 = vld [vmem:[#allocation5 + $0xd8] sm:$0xf0]  ;;  %v1029_v50 = vld [vmem:[#allocation5 + $0xa0] sm:$0xf]  ;;  %v1132_v51 = vld [vmem:[#allocation5 + $0xac] sm:$0xf0] }
  0x91   :  { %v1119_v43 = vld [vmem:[#allocation5 + $0x4c] sm:$0xf] }
  0x92   :  { %v122_v54 = vrot.slane %v89_v49, 6  ;;  %v1058_v49 = vor.u32 %v1135_v45, %v1055_v48  ;;  %694 = vmatpush.bf16.msra.mxu2 %v1054_v47  ;;  %v990_v45 = vor.u32 %v1121_v42, %v989_v37  ;;  %v965_v47 = vld [vmem:[#allocation5 + $0x20] sm:$0xf]  ;;  %v1116_v48 = vld [vmem:[#allocation5 + $0x2c] sm:$0xf0] }
  0x94   :  { %v125_v63 = vsel %vm57_vm0, %v76_v56, %v122_v54  ;;  %v1031_v54 = vld [vmem:[#allocation5 + $0xb0] sm:$0xf0]  ;;  %v1133_v56 = vld [vmem:[#allocation5 + $0xb4] sm:$0xf0]  ;;  %707 = vmatpush.bf16.msra.mxu3 %v1058_v49 }
  0x97   :  { %v114_v58 = vpop.f32.mrf.mxu3  ;;  %v90_v60 = vpop.f32.mrf.mxu1 }
  0x98   :  { %v101_v55 = vpop.f32.mrf.mxu2  ;;  %v115_v59 = vadd.f32 %v114_v58, %v42_v53  ;;  %v77_v0 = vpop.f32.mrf.mxu0  ;;  %v1030_v53 = vor.u32 %v1132_v51, %v1029_v50  ;;  %v1039_v60 = vld [vmem:[#allocation5 + $0xb8] sm:$0xf0] }
  0x99   :  { %v102_v57 = vadd.f32 %v101_v55, %v41_v52  ;;  %v1130_v52 = vld [vmem:[#allocation5 + $0xa4] sm:$0xf]  ;;  %v1037_v55 = vld [vmem:[#allocation5 + $0xa8] sm:$0xf]  ;;  %v1013_v0 = vld [vmem:[#allocation5 + $0x80] sm:$0xf] }
  0x9a   :  { %v124_v62 = vrot.slane %v115_v59, 2  ;;  %v1038_v58 = vor.u32 %v1133_v56, %v1037_v55  ;;  %v1131_v59 = vld [vmem:[#allocation5 + $0xac] sm:$0xf]  ;;  %669 = vmatpush.bf16.msra.mxu0 %v1030_v53  ;;  %v967_v53 = vld [vmem:[#allocation5 + $0x30] sm:$0xf0]  ;;  %v966_v56 = vor.u32 %v1116_v48, %v965_v47 }
  0x9b   :  { %v123_v61 = vrot.slane %v102_v57, 4  ;;  %v1034_v57 = vor.u32 %v1130_v52, %v1031_v54  ;;  %v1114_v52 = vld [vmem:[#allocation5 + $0x24] sm:$0xf] }
  0x9c   :  { %695 = vmatpush.bf16.msra.mxu2 %v1038_v58  ;;  %v973_v58 = vld [vmem:[#allocation5 + $0x28] sm:$0xf] }
  0x9d   :  { %v127_v1 = vsel %vm126_vm2, %v123_v61, %v124_v62  ;;  %v1042_v62 = vor.u32 %v1131_v59, %v1039_v60  ;;  %682 = vmatpush.bf16.msra.mxu1 %v1034_v57  ;;  %v970_v57 = vor.u32 %v1114_v52, %v967_v53  ;;  %v1117_v59 = vld [vmem:[#allocation5 + $0x34] sm:$0xf0] }
  0x9e   :  { %v129_v2 = vsel %vm128_vm3, %v125_v63, %v127_v1  ;;  %v1128_v1 = vld [vmem:[#allocation5 + $0x8c] sm:$0xf0] }
  0x9f   :  { %131 = vst [vmem:[#allocation2] sm:$0xff] %v129_v2  ;;  %v116_v4 = vpop.f32.mrf.mxu3  ;;  %708 = vmatpush.bf16.msra.mxu3 %v1042_v62 }
  0xa0   :  { %v103_v3 = vpop.f32.mrf.mxu2  ;;  %v1126_v4 = vld [vmem:[#allocation5 + $0x84] sm:$0xf] }
  0xa1   :  { %v1014_v3 = vor.u32 %v1128_v1, %v1013_v0  ;;  %v974_v1 = vor.u32 %v1117_v59, %v973_v58 }
  0xa3   :  { %670 = vmatpush.bf16.msra.mxu0 %v1014_v3  ;;  %v975_v3 = vld [vmem:[#allocation5 + $0x38] sm:$0xf0] }
  0xa6   :  { %v134_v15 = vld [vmem:[#allocation2] ss:$2 sm:$0xf] }
  0xaf   :  { %v338_v5 = vpop.f32.mrf.mxu0  ;;  %v351_v6 = vpop.f32.mrf.mxu1 }
  0xb0   :  { %v385_v7 = vrot.slane %v351_v6, 7  ;;  %v1021_v6 = vld [vmem:[#allocation5 + $0x88] sm:$0xf] }
  0xb2   :  { %v389_v10 = vsel %vm388_vm4, %v338_v5, %v385_v7  ;;  %v1015_v5 = vld [vmem:[#allocation5 + $0x90] sm:$0xf0]  ;;  %v1129_v7 = vld [vmem:[#allocation5 + $0x94] sm:$0xf0] }
  0xb6   :  { %v364_v8 = vpop.f32.mrf.mxu2 }
  0xb7   :  { %v377_v9 = vpop.f32.mrf.mxu3  ;;  %v386_v11 = vrot.slane %v364_v8, 6  ;;  %v340_v13 = vpop.f32.mrf.mxu0 }
  0xb8   :  { %v387_v12 = vrot.slane %v377_v9, 5  ;;  %v353_v14 = vpop.f32.mrf.mxu1  ;;  %v1018_v9 = vor.u32 %v1126_v4, %v1015_v5 }
  0xb9   :  { %v997_v14 = vld [vmem:[#allocation5 + $0x60] sm:$0xf] }
  0xba   :  { %v391_v16 = vsel %vm390_vm5, %v386_v11, %v387_v12  ;;  %v1127_v11 = vld [vmem:[#allocation5 + $0x8c] sm:$0xf]  ;;  %v1023_v12 = vld [vmem:[#allocation5 + $0x98] sm:$0xf0]  ;;  %683 = vmatpush.bf16.msra.mxu1 %v1018_v9  ;;  %v1110_v9 = vld [vmem:[#allocation5 + $0x4] sm:$0xf] }
  0xbb   :  { %v392_v17 = vsel %vm57_vm0, %v389_v10, %v391_v16  ;;  %v1022_v10 = vor.u32 %v1129_v7, %v1021_v6  ;;  %v1026_v13 = vor.u32 %v1127_v11, %v1023_v12  ;;  %v949_v6 = vld [vmem:[#allocation5] sm:$0xf]  ;;  %v1112_v7 = vld [vmem:[#allocation5 + $0xc] sm:$0xf0]  ;;  %v951_v12 = vld [vmem:[#allocation5 + $0x10] sm:$0xf0] }
  0xbc   :  { %v1257_v21 = vadd.f32 %v392_v17, %v134_v15  ;;  %v1124_v15 = vld [vmem:[#allocation5 + $0x6c] sm:$0xf0]  ;;  %v1122_v17 = vld [vmem:[#allocation5 + $0x64] sm:$0xf]  ;;  %v950_v11 = vor.u32 %v1112_v7, %v949_v6 }
  0xbd   :  { %696 = vmatpush.bf16.msra.mxu2 %v1022_v10  ;;  %709 = vmatpush.bf16.msra.mxu3 %v1026_v13  ;;  %v998_v20 = vor.u32 %v1124_v15, %v997_v14  ;;  %v1002_v22 = vor.u32 %v1122_v17, %v999_v18  ;;  %v957_v13 = vld [vmem:[#allocation5 + $0x8] sm:$0xf]  ;;  %v1113_v14 = vld [vmem:[#allocation5 + $0x14] sm:$0xf0]  ;;  %v954_v17 = vor.u32 %v1110_v9, %v951_v12 }
  0xbe   :  { %v944_v30 = vmul.f32 -1.442695, %v1257_v21  ;;  %v415_v31 = vrot.slane %v1257_v21, 1  ;;  %v439_v32 = vrot.slane %v1257_v21, 3  ;;  %v366_v33 = vpop.f32.mrf.mxu2  ;;  %v436_v19 = vrot.slane %v1257_v21, 2 }
  0xbf   :  { %v379_v34 = vpop.f32.mrf.mxu3  ;;  %671 = vmatpush.bf16.msra.mxu0 %v998_v20  ;;  %684 = vmatpush.bf16.msra.mxu1 %v1002_v22  ;;  %v1120_v33 = vld [vmem:[#allocation5 + $0x4c] sm:$0xf0]  ;;  %v1118_v21 = vld [vmem:[#allocation5 + $0x44] sm:$0xf]  ;;  %v958_v18 = vor.u32 %v1113_v14, %v957_v13  ;;  %v959_v20 = vld [vmem:[#allocation5 + $0x18] sm:$0xf0] }
  0xc0   :  { %1146 = vpow2.f32 %v944_v30  ;;  %v945_v39 = vmul.f32 -1.442695, %v415_v31  ;;  %v946_v46 = vmul.f32 -1.442695, %v439_v32  ;;  %v1010_v31 = vor.u32 %v1123_v28, %v1007_v29  ;;  %v981_v32 = vld [vmem:[#allocation5 + $0x40] sm:$0xf] }
  0xc1   :  { %697 = vmatpush.bf16.msra.mxu2 %v1006_v27  ;;  %v982_v35 = vor.u32 %v1120_v33, %v981_v32  ;;  %v986_v41 = vor.u32 %v1118_v21, %v983_v36 }
  0xc2   :  { %1148 = vpow2.f32 %v945_v39  ;;  %710 = vmatpush.bf16.msra.mxu3 %v1010_v31 }
  0xc3   :  { %1150 = vpow2.f32 %v946_v46  ;;  %v991_v46 = vld [vmem:[#allocation5 + $0x58] sm:$0xf0]  ;;  %672 = vmatpush.bf16.msra.mxu0 %v982_v35  ;;  %685 = vmatpush.bf16.msra.mxu1 %v986_v41 }
  0xc4   :  { %v994_v51 = vor.u32 %v1119_v43, %v991_v46 }
  0xc5   :  { %698 = vmatpush.bf16.msra.mxu2 %v990_v45 }
  0xc6   :  { %v1147_v61 = vpop.eup %1146  ;;  %711 = vmatpush.bf16.msra.mxu3 %v994_v51 }
  0xc7   :  { %v1262_v63 = vadd.f32 1.0, %v1147_v61  ;;  %673 = vmatpush.bf16.msra.mxu0 %v966_v56  ;;  %686 = vmatpush.bf16.msra.mxu1 %v970_v57 }
  0xc8   :  { %v1149_v2 = vpop.eup %1148 }
  0xc9   :  { %1152 = vrcp.f32 %v1262_v63  ;;  %v1265_v8 = vadd.f32 1.0, %v1149_v2  ;;  %v1151_v16 = vpop.eup %1150  ;;  %v408_v34 = vand.u32 2147483647, %v1262_v63  ;;  %v410_v40 = vand.u32 2147483648, %v1262_v63  ;;  %v1115_v2 = vld [vmem:[#allocation5 + $0x2c] sm:$0xf]  ;;  %699 = vmatpush.bf16.msra.mxu2 %v974_v1 }
  0xca   :  { %v1271_v26 = vadd.f32 1.0, %v1151_v16  ;;  %vm404_vm7 = vweird.f32 %v1262_v63  ;;  %v978_v5 = vor.u32 %v1115_v2, %v975_v3 }
  0xcb   :  { %1154 = vrcp.f32 %v1265_v8  ;;  %v430_v50 = vand.u32 2147483647, %v1265_v8  ;;  %vm1286_vm8 = vcmp.eq.f32.partialorder %v408_v34, 8.507059e+37  ;;  %v411_v62 = vor.u32 1.1754944e-38, %v410_v40  ;;  %674 = vmatpush.bf16.msra.mxu0 %v950_v11  ;;  %687 = vmatpush.bf16.msra.mxu1 %v954_v17 }
  0xcc   :  { %1156 = vtanh.f32 %v436_v19  ;;  %v432_v0 = vand.u32 2147483648, %v1265_v8  ;;  %vm426_vm11 = vweird.f32 %v1265_v8  ;;  %v1111_v19 = vld [vmem:[#allocation5 + $0xc] sm:$0xf]  ;;  %712 = vmatpush.bf16.msra.mxu3 %v978_v5  ;;  %v456_v35 = vand.u32 2147483648, %v1271_v26 }
  0xcd   :  { %1158 = vrcp.f32 %v1271_v26  ;;  %vm431_vm13 = vcmp.eq.f32.partialorder %v430_v50, 8.507059e+37  ;;  %700 = vmatpush.bf16.msra.mxu2 %v958_v18  ;;  %vm450_vm15 = vweird.f32 %v1271_v26  ;;  %v454_v36 = vand.u32 2147483647, %v1271_v26 }
  0xce   :  { %v433_v23 = vor.u32 1.1754944e-38, %v432_v0 }
  0xcf   :  { %v1269_v25 = vpop.eup %1152  ;;  %vm455_vm2 = vcmp.eq.f32.partialorder %v454_v36, 8.507059e+37 }
  0xd0   :  { %v400_v30 = vmul.f32 %v1269_v25, %v1262_v63  ;;  %vm405_vm6 = vweird.f32 %v1269_v25 }
  0xd1   :  { %v1276_v38 = vpop.eup %1154  ;;  %vm1295_vm9 = vmor %vm404_vm7, %vm405_vm6 }
  0xd2   :  { %v401_v39 = vsub.f32 1.0, %v400_v30  ;;  %v422_v44 = vmul.f32 %v1276_v38, %v1265_v8  ;;  %vm427_vm10 = vweird.f32 %v1276_v38  ;;  %v1157_v63 = vpop.eup %1156 }
  0xd3   :  { %v1159_v15 = vpop.eup %1158  ;;  %vm428_vm12 = vmor %vm426_vm11, %vm427_vm10 }
  0xd4   :  { %v402_v49 = vmul.f32 %v1269_v25, %v401_v39  ;;  %v423_v55 = vsub.f32 1.0, %v422_v44  ;;  %v446_v8 = vmul.f32 %v1159_v15, %v1271_v26  ;;  %vm451_vm14 = vweird.f32 %v1159_v15 }
  0xd5   :  { %vm452_vm1 = vmor %vm450_vm15, %vm451_vm14 }
  0xd6   :  { %v403_v60 = vadd.f32 %v1269_v25, %v402_v49  ;;  %v424_v4 = vmul.f32 %v1276_v38, %v423_v55  ;;  %v447_v32 = vsub.f32 1.0, %v446_v8  ;;  %v472_v55 = vld [vmem:[#allocation2 + $0x1] ss:$2 sm:$0xf] }
  0xd8   :  { %v407_v10 = vsel %vm1295_vm9, %v1269_v25, %v403_v60  ;;  %v425_v16 = vadd.f32 %v1276_v38, %v424_v4  ;;  %v962_v25 = vor.u32 %v1111_v19, %v959_v20  ;;  %v448_v33 = vmul.f32 %v1159_v15, %v447_v32 }
  0xd9   :  { %v412_v22 = vsel %vm1286_vm8, %v411_v62, %v407_v10 }
  0xda   :  { %v429_v27 = vsel %vm428_vm12, %v1276_v38, %v425_v16  ;;  %v462_v30 = vmul.f32 %v1157_v63, %v412_v22  ;;  %713 = vmatpush.bf16.msra.mxu3 %v962_v25  ;;  %v449_v21 = vadd.f32 %v1159_v15, %v448_v33  ;;  %v457_v38 = vor.u32 1.1754944e-38, %v456_v35 }
  0xdb   :  { %v434_v28 = vsel %vm431_vm13, %v433_v23, %v429_v27 }
  0xdc   :  { %v461_v29 = vmul.f32 %v460_v24, %v434_v28  ;;  %v453_v37 = vsel %vm452_vm1, %v1159_v15, %v449_v21 }
  0xdd   :  { %v458_v40 = vsel %vm455_vm2, %v457_v38, %v453_v37 }
  0xde   :  { %v463_v31 = vadd.f32 %v462_v30, %v461_v29 }
  0xe0   :  { %464 = vst [vmem:[#allocation4] sm:$0x1] %v463_v31 }
  0xe7   :  { %v465_v34 = vld [vmem:[#allocation4] sm:$0x1] }
  0xe8   :  { %1160 = vtanh.f32 %v465_v34  ;;  %v796_v33 = vld [vmem:[#allocation4] sm:$0x1] }
  0xee   :  { %v1161_v39 = vpop.eup %1160 }
  0xef   :  { %v467_v41 = vmul.f32 %v1161_v39, %v458_v40 }
  0xf1   :  { %468 = vst [vmem:[#allocation3] sm:$0x1] %v467_v41 }
  0xf8   :  { %v473_v42 = vld [vmem:[#allocation3] sm:$0x1] }
  0xf9   :  { %v469_v43 = vld [vmem:[#allocation3] sm:$0x1]  ;;  %v474_v44 = vpack.c.bf16 %v473_v42, %v473_v42 }
  0xfa   :  { %470 = vst [vmem:[%s1329_s4] sm:$0x1] %v469_v43 }
  0xfb   :  { %675 = vmatmul.bf16.vlgmr.msra.gmra.mxu0 %v474_v44  ;;  %688 = vmatmul.bf16.vlgmr.msra.gmra.mxu1 %v474_v44 }
  0xfc   :  { %701 = vmatmul.bf16.vlgmr.msra.gmra.mxu2 %v474_v44  ;;  %714 = vmatmul.bf16.vlgmr.msra.gmra.mxu3 %v474_v44 }
 0x178   :  { %v676_v26 = vpop.f32.mrf.mxu0  ;;  %v689_v45 = vpop.f32.mrf.mxu1 }
 0x179   :  { %v723_v46 = vrot.slane %v689_v45, 7 }
 0x17b   :  { %v726_v53 = vsel %vm388_vm4, %v676_v26, %v723_v46 }
 0x17f   :  { %v702_v47 = vpop.f32.mrf.mxu2  ;;  %v715_v48 = vpop.f32.mrf.mxu3 }
 0x180   :  { %v724_v49 = vrot.slane %v702_v47, 6  ;;  %v725_v50 = vrot.slane %v715_v48, 5  ;;  %v678_v51 = vpop.f32.mrf.mxu0  ;;  %v691_v52 = vpop.f32.mrf.mxu1 }
 0x182   :  { %v727_v54 = vsel %vm390_vm5, %v724_v49, %v725_v50 }
 0x183   :  { %v728_v56 = vsel %vm57_vm0, %v726_v53, %v727_v54 }
 0x184   :  { %v730_v57 = vadd.f32 %v728_v56, %v472_v55 }
 0x186   :  { %v1075_v58 = vmul.f32 -1.442695, %v730_v57  ;;  %v751_v59 = vrot.slane %v730_v57, 1  ;;  %v775_v60 = vrot.slane %v730_v57, 3  ;;  %v772_v12 = vrot.slane %v730_v57, 2 }
 0x187   :  { %v704_v61 = vpop.f32.mrf.mxu2  ;;  %v717_v62 = vpop.f32.mrf.mxu3 }
 0x188   :  { %1162 = vpow2.f32 %v1075_v58  ;;  %v1076_v0 = vmul.f32 -1.442695, %v751_v59  ;;  %v1077_v1 = vmul.f32 -1.442695, %v775_v60 }
 0x18a   :  { %1164 = vpow2.f32 %v1076_v0 }
 0x18b   :  { %1166 = vpow2.f32 %v1077_v1 }
 0x18e   :  { %v1163_v2 = vpop.eup %1162 }
 0x18f   :  { %v734_v3 = vadd.f32 1.0, %v1163_v2 }
 0x190   :  { %v1165_v4 = vpop.eup %1164 }
 0x191   :  { %1168 = vrcp.f32 %v734_v3  ;;  %v756_v5 = vadd.f32 1.0, %v1165_v4  ;;  %v1167_v6 = vpop.eup %1166  ;;  %v746_v15 = vand.u32 2147483648, %v734_v3  ;;  %v744_v16 = vand.u32 2147483647, %v734_v3 }
 0x192   :  { %v780_v9 = vadd.f32 1.0, %v1167_v6  ;;  %vm740_vm3 = vweird.f32 %v734_v3 }
 0x193   :  { %1170 = vrcp.f32 %v756_v5  ;;  %v768_v19 = vand.u32 2147483648, %v756_v5  ;;  %v766_v22 = vand.u32 2147483647, %v756_v5  ;;  %v747_v24 = vor.u32 1.1754944e-38, %v746_v15 }
 0x194   :  { %1172 = vrcp.f32 %v780_v9  ;;  %vm745_vm6 = vcmp.eq.f32.partialorder %v744_v16, 8.507059e+37  ;;  %vm762_vm7 = vweird.f32 %v756_v5  ;;  %v792_v40 = vand.u32 2147483648, %v780_v9 }
 0x195   :  { %1174 = vtanh.f32 %v772_v12  ;;  %v769_v8 = vor.u32 1.1754944e-38, %v768_v19  ;;  %vm767_vm9 = vcmp.eq.f32.partialorder %v766_v22, 8.507059e+37  ;;  %vm786_vm11 = vweird.f32 %v780_v9 }
 0x196   :  { %v790_v41 = vand.u32 2147483647, %v780_v9  ;;  %v793_v43 = vor.u32 1.1754944e-38, %v792_v40 }
 0x197   :  { %v1169_v7 = vpop.eup %1168 }
 0x198   :  { %v736_v63 = vmul.f32 %v1169_v7, %v734_v3  ;;  %vm741_vm0 = vweird.f32 %v1169_v7  ;;  %vm791_vm13 = vcmp.eq.f32.partialorder %v790_v41, 8.507059e+37 }
 0x199   :  { %v1171_v10 = vpop.eup %1170  ;;  %vm742_vm4 = vmor %vm740_vm3, %vm741_vm0 }
 0x19a   :  { %v737_v11 = vsub.f32 1.0, %v736_v63  ;;  %v758_v13 = vmul.f32 %v1171_v10, %v756_v5  ;;  %vm763_vm5 = vweird.f32 %v1171_v10  ;;  %v1173_v25 = vpop.eup %1172 }
 0x19b   :  { %vm764_vm8 = vmor %vm762_vm7, %vm763_vm5  ;;  %v1175_v30 = vpop.eup %1174  ;;  %v782_v32 = vmul.f32 %v1173_v25, %v780_v9  ;;  %vm787_vm10 = vweird.f32 %v1173_v25 }
 0x19c   :  { %v738_v14 = vmul.f32 %v1169_v7, %v737_v11  ;;  %v759_v17 = vsub.f32 1.0, %v758_v13  ;;  %vm788_vm12 = vmor %vm786_vm11, %vm787_vm10 }
 0x19d   :  { %v783_v36 = vsub.f32 1.0, %v782_v32 }
 0x19e   :  { %v739_v18 = vadd.f32 %v1169_v7, %v738_v14  ;;  %v760_v20 = vmul.f32 %v1171_v10, %v759_v17 }
 0x19f   :  { %v784_v37 = vmul.f32 %v1173_v25, %v783_v36 }
 0x1a0   :  { %v743_v23 = vsel %vm742_vm4, %v1169_v7, %v739_v18  ;;  %v761_v27 = vadd.f32 %v1171_v10, %v760_v20 }
 0x1a1   :  { %v748_v28 = vsel %vm745_vm6, %v747_v24, %v743_v23  ;;  %v785_v38 = vadd.f32 %v1173_v25, %v784_v37 }
 0x1a2   :  { %v765_v29 = vsel %vm764_vm8, %v1171_v10, %v761_v27  ;;  %v798_v34 = vmul.f32 %v1175_v30, %v748_v28 }
 0x1a3   :  { %v770_v31 = vsel %vm767_vm9, %v769_v8, %v765_v29  ;;  %v789_v42 = vsel %vm788_vm12, %v1173_v25, %v785_v38 }
 0x1a4   :  { %v797_v21 = vmul.f32 %v796_v33, %v770_v31  ;;  %v794_v26 = vsel %vm791_vm13, %v793_v43, %v789_v42 }
 0x1a6   :  { %v799_v35 = vadd.f32 %v798_v34, %v797_v21 }
 0x1a8   :  { %800 = vst [vmem:[#allocation4] sm:$0x1] %v799_v35 }
 0x1af   :  { %v801_v39 = vld [vmem:[#allocation4] sm:$0x1] }
 0x1b0   :  { %1176 = vtanh.f32 %v801_v39 }
 0x1b6   :  { %v1177_v44 = vpop.eup %1176 }
 0x1b7   :  { %v803_v45 = vmul.f32 %v1177_v44, %v794_v26 }
 0x1b9   :  { %804 = vst [vmem:[#allocation3] sm:$0x1] %v803_v45 }
 0x1c0   :  { %v805_v46 = vld [vmem:[#allocation3] sm:$0x1] }
 0x1c1   :  { %806 = vst [vmem:[%s1329_s4 + $0x1] sm:$0x1] %v805_v46 }
 0x1c2   :  { %811 = vsyncpa [#allocation6], 1 }

// kernel: lstmfcn_forward.3
= control target key start
LH: loop header
LB: loop body
LE: loop exit
PB: predicated region body
PF: predicated region fallthrough
CT: control target
= control target key end

     0   :  { %vm59_vm0 = vcmask 1041408   ;;  %vm55_vm1 = vcmask 31744   ;;  %vm299_vm2 = vcmask 261120   ;;  %vm517_vm3 = vcmask 523264   ;;  %s1966_s1 = inlined_call_operand.vmem [shape: bf16[8,4,32], index: 1, kind: input, shape index: {}]   ;;  %s1967_s0 = inlined_call_operand.vmem [shape: f32[2,16,4], index: 0, kind: input, shape index: {}]   ;;  %s1968_s2 = inlined_call_operand.vmem [shape: f32[1,32], index: 2, kind: input, shape index: {}]   ;;  %s1969_s3 = inlined_call_operand.vmem [shape: f32[1,32], index: 3, kind: input, shape index: {}]   ;;  %s1970_s4 = inlined_call_operand.vmem [shape: bf16[5,32,64], index: 4, kind: input, shape index: {}]   ;;  %s1971_s5 = inlined_call_operand.vmem [shape: f32[1,64], index: 5, kind: input, shape index: {}]   ;;  %s1972_s6 = inlined_call_operand.vmem [shape: f32[1,64], index: 6, kind: input, shape index: {}]   ;;  %s1973_s7 = inlined_call_operand.vmem [shape: bf16[3,64,32], index: 7, kind: input, shape index: {}]   ;;  %s1974_s8 = inlined_call_operand.vmem [shape: f32[1,32], index: 8, kind: input, shape index: {}]   ;;  %s1975_s9 = inlined_call_operand.vmem [shape: f32[1,32], index: 9, kind: input, shape index: {}]   ;;  %s1976_s10 = inlined_call_operand.vmem [shape: f32[2,1,32], index: 10, kind: output, shape index: {}]  }
   0x1   :  { %v40_v0 = vld [vmem:[%s1966_s1] sm:$0x3]  ;;  %v1255_v1 = vld [vmem:[%s1966_s1 + $0x4] sm:$0x3]  ;;  %v37_v5 = vld [vmem:[%s1967_s0 + $0x8] sm:$0xff]  ;;  %vm636_vm4 = vcmask 256000  }
   0x2   :  { %v36_v2 = vld [vmem:[%s1967_s0] sm:$0xff]  ;;  %v80_v3 = vsel %vm59_vm0, %v40_v0, 0  ;;  %v103_v4 = vsel %vm59_vm0, %v1255_v1, 0  ;;  %v39_v7 = vpack.c.bf16 %v37_v5, %v37_v5  ;;  %v1263_v10 = vld [vmem:[%s1966_s1 + $0xc] sm:$0x3]  ;;  %v1544_v45 = vld [vmem:[%s1970_s4 + $0x18] sm:$0xff] }
   0x3   :  { %v38_v6 = vpack.c.bf16 %v36_v2, %v36_v2  ;;  %89 = vmatpush.bf16.msra.mxu1 %v80_v3  ;;  %112 = vmatpush.bf16.msra.mxu2 %v103_v4  ;;  %v1252_v8 = vld [vmem:[%s1966_s1 + $0x2] sm:$0x3]  ;;  %v1257_v9 = vld [vmem:[%s1966_s1 + $0x6] sm:$0x3]  ;;  %v207_v14 = vsel %vm59_vm0, %v1263_v10, 0  ;;  %v1542_v39 = vld [vmem:[%s1970_s4 + $0x8] sm:$0xff] }
   0x4   :  { %v61_v12 = vsel %vm59_vm0, %v1252_v8, 0  ;;  %v130_v13 = vsel %vm59_vm0, %v1257_v9, 0  ;;  %v1259_v15 = vld [vmem:[%s1966_s1 + $0x8] sm:$0x3]  ;;  %v46_v16 = vunpack.c.l.b16 %v39_v7  ;;  %v1265_v18 = vld [vmem:[%s1966_s1 + $0xe] sm:$0x3] }
   0x5   :  { %v45_v11 = vunpack.c.l.b16 %v38_v6  ;;  %70 = vmatpush.bf16.msra.mxu0 %v61_v12  ;;  %139 = vmatpush.bf16.msra.mxu3 %v130_v13  ;;  %v155_v17 = vsel %vm59_vm0, %v1259_v15, 0  ;;  %v1261_v19 = vld [vmem:[%s1966_s1 + $0xa] sm:$0x3]  ;;  %v234_v20 = vsel %vm59_vm0, %v1265_v18, 0  ;;  %v1541_v41 = vld [vmem:[%s1970_s4] sm:$0xff]  ;;  %v1548_v46 = vld [vmem:[%s1970_s4 + $0x38] sm:$0xff] }
   0x6   :  { %v182_v21 = vsel %vm59_vm0, %v1261_v19, 0  ;;  %v1546_v42 = vld [vmem:[%s1970_s4 + $0x28] sm:$0xff]  ;;  %v1545_v47 = vld [vmem:[%s1970_s4 + $0x20] sm:$0xff]  ;;  %v1543_v50 = vld [vmem:[%s1970_s4 + $0x10] sm:$0xff]  ;;  %vm652_vm6 = vcmask 253952  }
   0x7   :  { %216 = vmatpush.bf16.msrb.mxu2 %v207_v14  ;;  %v47_v22 = vpack.c.b16 %v46_v16, %v45_v11  ;;  %191 = vmatpush.bf16.msrb.mxu1 %v182_v21  ;;  %v1547_v51 = vld [vmem:[%s1970_s4 + $0x30] sm:$0xff]  ;;  %v1550_v56 = vld [vmem:[%s1970_s4 + $0x48] sm:$0xff]  ;;  %v1549_v59 = vld [vmem:[%s1970_s4 + $0x40] sm:$0xff] }
   0x8   :  { %v1586_v4 = vld [vmem:[%s1968_s2] ss:$0 sm:$0xff] }
   0x9   :  { %164 = vmatpush.bf16.msrb.mxu0 %v155_v17  ;;  %243 = vmatpush.bf16.msrb.mxu3 %v234_v20  ;;  %v98_v23 = vrot.slane %v47_v22, 1  ;;  %v49_v24 = vshrl.u32 %v47_v22, 16  ;;  %v51_v25 = vshll.u32 %v47_v22, 16  ;;  %v202_v34 = vrot.slane %v47_v22, 3  ;;  %v1587_v8 = vld [vmem:[%s1969_s3] ss:$0 sm:$0xff] }
   0xa   :  { %1254 = vmatmul.msk.bf16.vlgmr.msra.gmra.mxu1 %vm55_vm1, %v47_v22  ;;  %v150_v37 = vrot.slane %v47_v22, 2 }
   0xb   :  { %1256 = vmatmul.msk.bf16.vlgmr.msra.gmra.mxu2 %vm55_vm1, %v98_v23  ;;  %v53_v26 = vrot.slane %v51_v25, 1  ;;  %v123_v27 = vrot.slane %v49_v24, 1  ;;  %v124_v28 = vrot.slane %v51_v25, 2  ;;  %v175_v31 = vrot.slane %v49_v24, 2  ;;  %337 = vmatpush.bf16.msra.mxu1 %v1542_v39  ;;  %v1553_v39 = vld [vmem:[%s1973_s7 + $0x10] sm:$0xff] }
   0xc   :  { %v176_v32 = vrot.slane %v51_v25, 3  ;;  %v227_v35 = vrot.slane %v49_v24, 3  ;;  %v228_v36 = vrot.slane %v51_v25, 4  ;;  %371 = vmatpush.bf16.msra.mxu2 %v1546_v42  ;;  %v1558_v42 = vld [vmem:[%s1973_s7 + $0x38] sm:$0xff] }
   0xd   :  { %v54_v29 = vor.u32 %v53_v26, %v49_v24  ;;  %v125_v30 = vor.u32 %v124_v28, %v123_v27 }
   0xe   :  { %v177_v33 = vor.u32 %v176_v32, %v175_v31  ;;  %v229_v38 = vor.u32 %v228_v36, %v227_v35 }
   0xf   :  { %1253 = vmatmul.msk.bf16.vlgmr.msra.gmra.mxu0 %vm55_vm1, %v54_v29  ;;  %1258 = vmatmul.msk.bf16.vlgmr.msra.gmra.mxu3 %vm55_vm1, %v125_v30 }
  0x10   :  { %338 = vmatpush.bf16.msra.mxu1 %v1541_v41  ;;  %309 = vmatpush.bf16.msra.mxu0 %v1544_v45  ;;  %v1552_v41 = vld [vmem:[%s1973_s7 + $0x8] sm:$0xff]  ;;  %v1396_v45 = vld [vmem:[%s1967_s0 + $0x18] sm:$0xff] }
  0x11   :  { %408 = vmatpush.bf16.msra.mxu3 %v1548_v46  ;;  %372 = vmatpush.bf16.msra.mxu2 %v1545_v47  ;;  %v1551_v47 = vld [vmem:[%s1973_s7] sm:$0xff] }
  0x14   :  { %310 = vmatpush.bf16.msra.mxu0 %v1543_v50 }
  0x15   :  { %409 = vmatpush.bf16.msra.mxu3 %v1547_v51  ;;  %v658_v51 = vpack.c.bf16 %v1396_v45, %v1396_v45 }
  0x1a   :  { %1262 = vmatmul.msk.bf16.vlgmr.msrb.gmra.mxu1 %vm55_vm1, %v177_v33 }
  0x1b   :  { %1264 = vmatmul.msk.bf16.vlgmr.msrb.gmra.mxu2 %vm55_vm1, %v202_v34  ;;  %525 = vmatpush.bf16.msrb.mxu1 %v1558_v42 }
  0x1f   :  { %1260 = vmatmul.msk.bf16.vlgmr.msrb.gmra.mxu0 %vm55_vm1, %v150_v37  ;;  %1266 = vmatmul.msk.bf16.vlgmr.msrb.gmra.mxu3 %vm55_vm1, %v229_v38  ;;  %v1554_v38 = vld [vmem:[%s1973_s7 + $0x18] sm:$0xff] }
  0x20   :  { %446 = vmatpush.bf16.msrb.mxu0 %v1550_v56  ;;  %565 = vmatpush.bf16.msrb.mxu2 %v1554_v38 }
  0x24   :  { %447 = vmatpush.bf16.msrb.mxu0 %v1549_v59  ;;  %566 = vmatpush.bf16.msrb.mxu2 %v1553_v39 }
  0x28   :  { %567 = vmatpush.bf16.msrb.mxu2 %v1552_v41 }
  0x2c   :  { %568 = vmatpush.bf16.msrb.mxu2 %v1551_v47 }
  0x87   :  { %v91_v40 = vpop.f32.mrf.mxu1 }
  0x8c   :  { %v72_v43 = vpop.f32.mrf.mxu0 }
  0x8d   :  { %v92_v53 = vadd.f32 %v91_v40, %v72_v43  ;;  %v1562_v40 = vld [vmem:[%s1973_s7 + $0x58] sm:$0xff]  ;;  %v1561_v43 = vld [vmem:[%s1973_s7 + $0x50] sm:$0xff] }
  0x8e   :  { %v114_v44 = vpop.f32.mrf.mxu2  ;;  %615 = vmatpush.bf16.msrb.mxu3 %v1562_v40 }
  0x8f   :  { %v93_v48 = vpop.f32.mrf.mxu1  ;;  %v119_v55 = vadd.f32 %v114_v44, %v92_v53  ;;  %v1395_v44 = vld [vmem:[%s1967_s0 + $0x10] sm:$0xff]  ;;  %v1559_v53 = vld [vmem:[%s1973_s7 + $0x40] sm:$0xff] }
  0x90   :  { %v657_v50 = vpack.c.bf16 %v1395_v44, %v1395_v44 }
  0x92   :  { %v141_v49 = vpop.f32.mrf.mxu3  ;;  %616 = vmatpush.bf16.msrb.mxu3 %v1561_v43 }
  0x93   :  { %v146_v58 = vadd.f32 %v141_v49, %v119_v55  ;;  %v1560_v49 = vld [vmem:[%s1973_s7 + $0x48] sm:$0xff]  ;;  %v664_v55 = vunpack.c.l.b16 %v658_v51 }
  0x94   :  { %v74_v52 = vpop.f32.mrf.mxu0 }
  0x95   :  { %v94_v62 = vadd.f32 %v93_v48, %v74_v52  ;;  %v1557_v48 = vld [vmem:[%s1973_s7 + $0x30] sm:$0xff]  ;;  %v1556_v52 = vld [vmem:[%s1973_s7 + $0x28] sm:$0xff] }
  0x96   :  { %v116_v54 = vpop.f32.mrf.mxu2  ;;  %526 = vmatpush.bf16.msrb.mxu1 %v1557_v48  ;;  %617 = vmatpush.bf16.msrb.mxu3 %v1560_v49 }
  0x97   :  { %v193_v60 = vpop.f32.mrf.mxu1  ;;  %v120_v2 = vadd.f32 %v116_v54, %v94_v62  ;;  %v663_v54 = vunpack.c.l.b16 %v657_v50  ;;  %v1402_v62 = vld [vmem:[%s1966_s1 + $0x6] sm:$0x3] }
  0x99   :  { %v1785_v59 = vpack.c.b16 %v664_v55, %v663_v54 }
  0x9a   :  { %v143_v57 = vpop.f32.mrf.mxu3  ;;  %527 = vmatpush.bf16.msrb.mxu1 %v1556_v52  ;;  %618 = vmatpush.bf16.msrb.mxu3 %v1559_v53  ;;  %v1600_v53 = vmov 3.0  }
  0x9b   :  { %v147_v6 = vadd.f32 %v143_v57, %v120_v2  ;;  %v744_v2 = vsel %vm59_vm0, %v1402_v62, 0  ;;  %v713_v41 = vrot.slane %v1785_v59, 1  ;;  %v813_v45 = vrot.slane %v1785_v59, 3 }
  0x9c   :  { %v166_v61 = vpop.f32.mrf.mxu0  ;;  %1598 = vrcp.f32 %v1600_v53 }
  0x9d   :  { %v171_v63 = vadd.f32 %v166_v61, %v146_v58  ;;  %v1555_v58 = vld [vmem:[%s1973_s7 + $0x20] sm:$0xff] }
  0x9e   :  { %v218_v0 = vpop.f32.mrf.mxu2  ;;  %v1397_v61 = vld [vmem:[%s1966_s1 + $0x2] sm:$0x3]  ;;  %528 = vmatpush.bf16.msrb.mxu1 %v1555_v58 }
  0x9f   :  { %v198_v1 = vadd.f32 %v193_v60, %v171_v63  ;;  %v195_v12 = vpop.f32.mrf.mxu1  ;;  %v1400_v60 = vld [vmem:[%s1966_s1 + $0x4] sm:$0x3] }
  0xa1   :  { %v223_v3 = vadd.f32 %v218_v0, %v198_v1  ;;  %v718_v0 = vsel %vm59_vm0, %v1400_v60, 0  ;;  %v677_v1 = vsel %vm59_vm0, %v1397_v61, 0  ;;  %v1591_v60 = vld [vmem:[%s1975_s9] ss:$0 sm:$0xff] }
  0xa2   :  { %v245_v5 = vpop.f32.mrf.mxu3 }
  0xa3   :  { %v250_v7 = vadd.f32 %v245_v5, %v223_v3  ;;  %v659_v3 = vld [vmem:[%s1966_s1] sm:$0x3]  ;;  %v1806_v5 = vshll.u32 %v1785_v59, 16 }
  0xa4   :  { %v168_v9 = vpop.f32.mrf.mxu0 }
  0xa5   :  { %v256_v10 = vmul.f32 %v1586_v4, %v250_v7  ;;  %v172_v11 = vadd.f32 %v168_v9, %v147_v6  ;;  %v696_v7 = vsel %vm59_vm0, %v659_v3, 0  ;;  %v738_v43 = vrot.slane %v1806_v5, 2 }
  0xa6   :  { %v220_v15 = vpop.f32.mrf.mxu2  ;;  %v838_v47 = vrot.slane %v1806_v5, 4  ;;  %v788_v50 = vrot.slane %v1806_v5, 3 }
  0xa7   :  { %v262_v13 = vadd.f32 %v1587_v8, %v256_v10  ;;  %v199_v14 = vadd.f32 %v195_v12, %v172_v11 }
  0xa9   :  { %v264_v16 = vmax.f32 %v262_v13, 0.0  ;;  %v224_v17 = vadd.f32 %v220_v15, %v199_v14 }
  0xaa   :  { %v247_v18 = vpop.f32.mrf.mxu3 }
  0xab   :  { %v266_v19 = vpack.c.bf16 %v264_v16, %v264_v16  ;;  %v251_v20 = vadd.f32 %v247_v18, %v224_v17  ;;  %v1588_v16 = vld [vmem:[%s1971_s5] ss:$0 sm:$0xff] }
  0xad   :  { %v278_v21 = vunpack.c.l.b16 %v266_v19  ;;  %v257_v22 = vmul.f32 %v1586_v4, %v251_v20  ;;  %1288 = vmatmul.msk.bf16.vlgmr.msra.gmra.mxu1 %vm299_vm2, %v266_v19  ;;  %v1803_v4 = vshrl.u32 %v1785_v59, 16  ;;  %v1589_v19 = vld [vmem:[%s1972_s6] ss:$0 sm:$0xff]  ;;  %v1404_v20 = vld [vmem:[%s1966_s1 + $0x8] sm:$0x3] }
  0xae   :  { %705 = vmatpush.bf16.msra.mxu1 %v696_v7  ;;  %v1563_v7 = vld [vmem:[%s1970_s4] sm:$0xff] }
  0xaf   :  { %v279_v23 = vpack.c.b16 %v278_v21, %v278_v21  ;;  %v263_v25 = vadd.f32 %v1587_v8, %v257_v22  ;;  %v671_v8 = vrot.slane %v1806_v5, 1  ;;  %v737_v42 = vrot.slane %v1803_v4, 1 }
  0xb0   :  { %v787_v49 = vrot.slane %v1803_v4, 2 }
  0xb1   :  { %v283_v24 = vshll.u32 %v279_v23, 16  ;;  %v349_v26 = vrot.slane %v279_v23, 1  ;;  %v281_v27 = vshrl.u32 %v279_v23, 16  ;;  %v265_v31 = vmax.f32 %v263_v25, 0.0 }
  0xb2   :  { %v672_v11 = vor.u32 %v671_v8, %v1803_v4  ;;  %v739_v44 = vor.u32 %v738_v43, %v737_v42  ;;  %v789_v51 = vor.u32 %v788_v50, %v787_v49  ;;  %v1593_v50 = vld [vmem:[%s1969_s3] ss:$0 sm:$0xff] }
  0xb3   :  { %1301 = vmatmul.msk.bf16.vlgmr.msra.gmra.mxu2 %vm299_vm2, %v349_v26  ;;  %v285_v28 = vrot.slane %v283_v24, 1  ;;  %v384_v29 = vrot.slane %v281_v27, 1  ;;  %v385_v30 = vrot.slane %v283_v24, 2  ;;  %v267_v34 = vpack.c.bf16 %v265_v31, %v265_v31  ;;  %v1408_v24 = vld [vmem:[%s1966_s1 + $0xc] sm:$0x3] }
  0xb4   :  { %727 = vmatpush.bf16.msra.mxu2 %v718_v0  ;;  %v763_v26 = vrot.slane %v1785_v59, 2  ;;  %v1410_v31 = vld [vmem:[%s1966_s1 + $0xe] sm:$0x3] }
  0xb5   :  { %v286_v32 = vor.u32 %v285_v28, %v281_v27  ;;  %v386_v33 = vor.u32 %v385_v30, %v384_v29  ;;  %v422_v35 = vunpack.c.l.b16 %v267_v34  ;;  %v818_v29 = vsel %vm59_vm0, %v1408_v24, 0 }
  0xb7   :  { %1279 = vmatmul.msk.bf16.vlgmr.msra.gmra.mxu0 %vm299_vm2, %v286_v32  ;;  %1314 = vmatmul.msk.bf16.vlgmr.msra.gmra.mxu3 %vm299_vm2, %v386_v33  ;;  %v423_v36 = vpack.c.b16 %v422_v35, %v278_v21  ;;  %v768_v21 = vsel %vm59_vm0, %v1404_v20, 0  ;;  %v844_v35 = vsel %vm59_vm0, %v1410_v31, 0 }
  0xb8   :  { %686 = vmatpush.bf16.msra.mxu0 %v677_v1  ;;  %753 = vmatpush.bf16.msra.mxu3 %v744_v2  ;;  %v1564_v1 = vld [vmem:[%s1970_s4 + $0x8] sm:$0xff] }
  0xb9   :  { %v424_v37 = vrot.slane %v423_v36, 2  ;;  %v1406_v36 = vld [vmem:[%s1966_s1 + $0xa] sm:$0x3] }
  0xba   :  { %v794_v40 = vsel %vm59_vm0, %v1406_v36, 0 }
  0xc7   :  { %1327 = vmatmul.msk.bf16.vlgmr.msrb.gmra.mxu0 %vm299_vm2, %v424_v37 }
  0xc8   :  { %777 = vmatpush.bf16.msrb.mxu0 %v768_v21 }
  0xd7   :  { %1398 = vmatmul.msk.bf16.vlgmr.msra.gmra.mxu0 %vm55_vm1, %v672_v11  ;;  %v1568_v11 = vld [vmem:[%s1970_s4 + $0x28] sm:$0xff] }
  0xe7   :  { %1405 = vmatmul.msk.bf16.vlgmr.msrb.gmra.mxu0 %vm55_vm1, %v763_v26  ;;  %v1569_v26 = vld [vmem:[%s1970_s4 + $0x30] sm:$0xff] }
 0x12a   :  { %v340_v46 = vpop.f32.mrf.mxu1 }
 0x132   :  { %v342_v56 = vpop.f32.mrf.mxu1 }
 0x133   :  { %v1590_v56 = vld [vmem:[%s1974_s8] ss:$0 sm:$0xff] }
 0x134   :  { %v312_v57 = vpop.f32.mrf.mxu0 }
 0x135   :  { %v341_v10 = vadd.f32 %v340_v46, %v312_v57  ;;  %v837_v46 = vrot.slane %v1803_v4, 3  ;;  %v1599_v57 = vpop.eup %1598 }
 0x136   :  { %v374_v63 = vpop.f32.mrf.mxu2  ;;  %vm649_vm5 = vweird.f32 %v1599_v57 }
 0x137   :  { %v378_v13 = vadd.f32 %v374_v63, %v341_v10  ;;  %v839_v48 = vor.u32 %v838_v47, %v837_v46  ;;  %v645_v63 = vmul.f32 3.0, %v1599_v57  ;;  %v1592_v47 = vld [vmem:[%s1968_s2] ss:$0 sm:$0xff] }
 0x139   :  { %v646_v5 = vsub.f32 1.0, %v645_v63 }
 0x13a   :  { %v411_v6 = vpop.f32.mrf.mxu3 }
 0x13b   :  { %v415_v15 = vadd.f32 %v411_v6, %v378_v13 }
 0x13c   :  { %v314_v9 = vpop.f32.mrf.mxu0 }
 0x13e   :  { %v376_v12 = vpop.f32.mrf.mxu2 }
 0x13f   :  { %v647_v12 = vmul.f32 %v1599_v57, %v646_v5 }
 0x141   :  { %v648_v20 = vadd.f32 %v1599_v57, %v647_v12 }
 0x142   :  { %v413_v14 = vpop.f32.mrf.mxu3 }
 0x144   :  { %v449_v17 = vpop.f32.mrf.mxu0 }
 0x145   :  { %v453_v18 = vadd.f32 %v449_v17, %v415_v15  ;;  %v1566_v17 = vld [vmem:[%s1970_s4 + $0x18] sm:$0xff] }
 0x146   :  { %917 = vmatpush.bf16.msra.mxu0 %v1566_v17  ;;  %v1584_v17 = vld [vmem:[%s1973_s7 + $0x58] sm:$0xff] }
 0x147   :  { %v458_v22 = vmul.f32 %v1588_v16, %v453_v18  ;;  %v1570_v18 = vld [vmem:[%s1970_s4 + $0x38] sm:$0xff] }
 0x149   :  { %v463_v23 = vadd.f32 %v1589_v19, %v458_v22  ;;  %v1567_v19 = vld [vmem:[%s1970_s4 + $0x20] sm:$0xff] }
 0x14b   :  { %v464_v25 = vmax.f32 %v463_v23, 0.0 }
 0x14c   :  { %v451_v27 = vpop.f32.mrf.mxu0 }
 0x14d   :  { %v465_v28 = vpack.c.bf16 %v464_v25, %v464_v25  ;;  %v1565_v25 = vld [vmem:[%s1970_s4 + $0x10] sm:$0xff]  ;;  %v1885_v27 = vsel %vm649_vm5, %v1599_v57, %v648_v20 }
 0x14e   :  { %918 = vmatpush.bf16.msra.mxu0 %v1565_v25  ;;  %v1583_v20 = vld [vmem:[%s1973_s7 + $0x50] sm:$0xff]  ;;  %v1578_v25 = vld [vmem:[%s1973_s7 + $0x28] sm:$0xff] }
 0x14f   :  { %v484_v30 = vunpack.c.l.b16 %v465_v28  ;;  %1369 = vmatmul.msk.bf16.vlgmr.msrb.gmra.mxu2 %vm517_vm3, %v465_v28 }
 0x150   :  { %827 = vmatpush.bf16.msrb.mxu2 %v818_v29 }
 0x151   :  { %v485_v32 = vpack.c.b16 %v484_v30, %v484_v30 }
 0x153   :  { %v489_v33 = vshll.u32 %v485_v32, 16  ;;  %v583_v34 = vrot.slane %v485_v32, 1  ;;  %v487_v37 = vshrl.u32 %v485_v32, 16 }
 0x154   :  { %v688_v0 = vpop.f32.mrf.mxu0 }
 0x155   :  { %v491_v38 = vrot.slane %v489_v33, 1  ;;  %1394 = vmatmul.msk.bf16.vlgmr.msrb.gmra.mxu3 %vm517_vm3, %v583_v34 }
 0x156   :  { %853 = vmatpush.bf16.msrb.mxu3 %v844_v35 }
 0x157   :  { %v492_v39 = vor.u32 %v491_v38, %v487_v37  ;;  %v1572_v37 = vld [vmem:[%s1970_s4 + $0x48] sm:$0xff]  ;;  %v1571_v38 = vld [vmem:[%s1970_s4 + $0x40] sm:$0xff] }
 0x158   :  { %1051 = vmatpush.bf16.msrb.mxu0 %v1572_v37 }
 0x159   :  { %1352 = vmatmul.msk.bf16.vlgmr.msrb.gmra.mxu1 %vm517_vm3, %v492_v39 }
 0x15a   :  { %803 = vmatpush.bf16.msrb.mxu1 %v794_v40 }
 0x15c   :  { %v690_v15 = vpop.f32.mrf.mxu0  ;;  %1052 = vmatpush.bf16.msrb.mxu0 %v1571_v38 }
 0x15f   :  { %1401 = vmatmul.msk.bf16.vlgmr.msra.gmra.mxu2 %vm55_vm1, %v713_v41 }
 0x160   :  { %978 = vmatpush.bf16.msra.mxu2 %v1568_v11 }
 0x164   :  { %979 = vmatpush.bf16.msra.mxu2 %v1567_v19  ;;  %v779_v33 = vpop.f32.mrf.mxu0  ;;  %v1580_v19 = vld [vmem:[%s1973_s7 + $0x38] sm:$0xff] }
 0x165   :  { %1403 = vmatmul.msk.bf16.vlgmr.msra.gmra.mxu3 %vm55_vm1, %v739_v44 }
 0x166   :  { %1014 = vmatpush.bf16.msra.mxu3 %v1570_v18  ;;  %v1574_v18 = vld [vmem:[%s1973_s7 + $0x8] sm:$0xff] }
 0x169   :  { %1399 = vmatmul.msk.bf16.vlgmr.msra.gmra.mxu1 %vm55_vm1, %v1785_v59 }
 0x16a   :  { %945 = vmatpush.bf16.msra.mxu1 %v1564_v1  ;;  %1015 = vmatpush.bf16.msra.mxu3 %v1569_v26  ;;  %v1581_v26 = vld [vmem:[%s1973_s7 + $0x40] sm:$0xff] }
 0x16e   :  { %946 = vmatpush.bf16.msra.mxu1 %v1563_v7 }
 0x16f   :  { %1409 = vmatmul.msk.bf16.vlgmr.msrb.gmra.mxu2 %vm55_vm1, %v813_v45 }
 0x175   :  { %1411 = vmatmul.msk.bf16.vlgmr.msrb.gmra.mxu3 %vm55_vm1, %v839_v48  ;;  %v781_v48 = vpop.f32.mrf.mxu0 }
 0x176   :  { %1217 = vmatpush.bf16.msrb.mxu3 %v1584_v17 }
 0x179   :  { %1407 = vmatmul.msk.bf16.vlgmr.msrb.gmra.mxu1 %vm55_vm1, %v789_v51 }
 0x17a   :  { %1128 = vmatpush.bf16.msrb.mxu1 %v1580_v19  ;;  %1218 = vmatpush.bf16.msrb.mxu3 %v1583_v20 }
 0x1d2   :  { %v570_v52 = vpop.f32.mrf.mxu2 }
 0x1d6   :  { %v530_v54 = vpop.f32.mrf.mxu1 }
 0x1d7   :  { %v571_v55 = vadd.f32 %v570_v52, %v530_v54 }
 0x1d8   :  { %v620_v58 = vpop.f32.mrf.mxu3 }
 0x1d9   :  { %v624_v59 = vadd.f32 %v620_v58, %v571_v55 }
 0x1da   :  { %v572_v61 = vpop.f32.mrf.mxu2 }
 0x1db   :  { %v629_v62 = vmul.f32 %v1590_v56, %v624_v59 }
 0x1dd   :  { %v634_v2 = vadd.f32 %v1591_v60, %v629_v62 }
 0x1de   :  { %v532_v3 = vpop.f32.mrf.mxu1 }
 0x1df   :  { %v635_v4 = vmax.f32 %v634_v2, 0.0 }
 0x1e0   :  { %v622_v6 = vpop.f32.mrf.mxu3 }
 0x1e1   :  { %v637_v8 = vsel %vm636_vm4, %v635_v4, 0.0 }
 0x1e2   :  { %v638_v9 = vrot.slane %v637_v8, 4  ;;  %v729_v10 = vpop.f32.mrf.mxu2 }
 0x1e4   :  { %v639_v13 = vadd.f32 %v638_v9, %v637_v8 }
 0x1e6   :  { %v640_v14 = vrot.slane %v639_v13, 2  ;;  %v707_v16 = vpop.f32.mrf.mxu1 }
 0x1e7   :  { %v708_v23 = vadd.f32 %v707_v16, %v688_v0  ;;  %v1575_v16 = vld [vmem:[%s1973_s7 + $0x10] sm:$0xff] }
 0x1e8   :  { %v641_v21 = vadd.f32 %v640_v14, %v639_v13  ;;  %v755_v22 = vpop.f32.mrf.mxu3 }
 0x1e9   :  { %v734_v30 = vadd.f32 %v729_v10, %v708_v23  ;;  %v1579_v23 = vld [vmem:[%s1973_s7 + $0x30] sm:$0xff] }
 0x1ea   :  { %v642_v24 = vrot.slane %v641_v21, 1  ;;  %v731_v29 = vpop.f32.mrf.mxu2  ;;  %1129 = vmatpush.bf16.msrb.mxu1 %v1579_v23 }
 0x1eb   :  { %v760_v35 = vadd.f32 %v755_v22, %v734_v30  ;;  %v1573_v22 = vld [vmem:[%s1973_s7] sm:$0xff] }
 0x1ec   :  { %v643_v28 = vadd.f32 %v642_v24, %v641_v21  ;;  %v1582_v24 = vld [vmem:[%s1973_s7 + $0x48] sm:$0xff]  ;;  %v1577_v30 = vld [vmem:[%s1973_s7 + $0x20] sm:$0xff] }
 0x1ed   :  { %v784_v39 = vadd.f32 %v779_v33, %v760_v35  ;;  %1219 = vmatpush.bf16.msrb.mxu3 %v1582_v24 }
 0x1ee   :  { %v651_v31 = vmul.f32 %v1885_v27, %v643_v28  ;;  %v709_v32 = vpop.f32.mrf.mxu1  ;;  %1130 = vmatpush.bf16.msrb.mxu1 %v1578_v25 }
 0x1ef   :  { %v710_v36 = vadd.f32 %v709_v32, %v690_v15  ;;  %v1576_v15 = vld [vmem:[%s1973_s7 + $0x18] sm:$0xff] }
 0x1f0   :  { %653 = vst.msk [vmem:[%s1976_s10] sm:$0x1] %vm652_vm6, %v651_v31  ;;  %v757_v34 = vpop.f32.mrf.mxu3  ;;  %1168 = vmatpush.bf16.msrb.mxu2 %v1576_v15 }
 0x1f1   :  { %v735_v40 = vadd.f32 %v731_v29, %v710_v36  ;;  %1220 = vmatpush.bf16.msrb.mxu3 %v1581_v26 }
 0x1f2   :  { %v829_v41 = vpop.f32.mrf.mxu2  ;;  %1131 = vmatpush.bf16.msrb.mxu1 %v1577_v30 }
 0x1f3   :  { %v761_v45 = vadd.f32 %v757_v34, %v735_v40 }
 0x1f4   :  { %1169 = vmatpush.bf16.msrb.mxu2 %v1575_v16 }
 0x1f5   :  { %v785_v51 = vadd.f32 %v781_v48, %v761_v45 }
 0x1f6   :  { %v805_v42 = vpop.f32.mrf.mxu1 }
 0x1f7   :  { %v810_v43 = vadd.f32 %v805_v42, %v784_v39  ;;  %v1594_v39 = vld [vmem:[%s1971_s5] ss:$0 sm:$0xff] }
 0x1f8   :  { %v855_v44 = vpop.f32.mrf.mxu3  ;;  %1170 = vmatpush.bf16.msrb.mxu2 %v1574_v18  ;;  %v1595_v42 = vld [vmem:[%s1972_s6] ss:$0 sm:$0xff] }
 0x1f9   :  { %v834_v46 = vadd.f32 %v829_v41, %v810_v43 }
 0x1fa   :  { %v831_v56 = vpop.f32.mrf.mxu2 }
 0x1fb   :  { %v860_v49 = vadd.f32 %v855_v44, %v834_v46 }
 0x1fc   :  { %1171 = vmatpush.bf16.msrb.mxu2 %v1573_v22 }
 0x1fd   :  { %v866_v52 = vmul.f32 %v1592_v47, %v860_v49 }
 0x1fe   :  { %v807_v53 = vpop.f32.mrf.mxu1 }
 0x1ff   :  { %v872_v54 = vadd.f32 %v1593_v50, %v866_v52  ;;  %v811_v55 = vadd.f32 %v807_v53, %v785_v51 }
 0x200   :  { %v857_v59 = vpop.f32.mrf.mxu3 }
 0x201   :  { %v874_v57 = vmax.f32 %v872_v54, 0.0  ;;  %v835_v58 = vadd.f32 %v831_v56, %v811_v55 }
 0x203   :  { %v876_v60 = vpack.c.bf16 %v874_v57, %v874_v57  ;;  %v861_v61 = vadd.f32 %v857_v59, %v835_v58  ;;  %v1596_v58 = vld [vmem:[%s1974_s8] ss:$0 sm:$0xff] }
 0x205   :  { %v887_v62 = vunpack.c.l.b16 %v876_v60  ;;  %v867_v63 = vmul.f32 %v1592_v47, %v861_v61  ;;  %1433 = vmatmul.msk.bf16.vlgmr.msra.gmra.mxu1 %vm299_vm2, %v876_v60  ;;  %v1597_v61 = vld [vmem:[%s1975_s9] ss:$0 sm:$0xff] }
 0x207   :  { %v888_v0 = vpack.c.b16 %v887_v62, %v887_v62  ;;  %v873_v2 = vadd.f32 %v1593_v50, %v867_v63 }
 0x209   :  { %v892_v1 = vshll.u32 %v888_v0, 16  ;;  %v956_v3 = vrot.slane %v888_v0, 1  ;;  %v890_v4 = vshrl.u32 %v888_v0, 16  ;;  %v875_v8 = vmax.f32 %v873_v2, 0.0 }
 0x20b   :  { %1446 = vmatmul.msk.bf16.vlgmr.msra.gmra.mxu2 %vm299_vm2, %v956_v3  ;;  %v894_v5 = vrot.slane %v892_v1, 1  ;;  %v990_v6 = vrot.slane %v890_v4, 1  ;;  %v991_v7 = vrot.slane %v892_v1, 2  ;;  %v877_v11 = vpack.c.bf16 %v875_v8, %v875_v8 }
 0x20d   :  { %v895_v9 = vor.u32 %v894_v5, %v890_v4  ;;  %v992_v10 = vor.u32 %v991_v7, %v990_v6  ;;  %v1027_v12 = vunpack.c.l.b16 %v877_v11 }
 0x20f   :  { %1424 = vmatmul.msk.bf16.vlgmr.msra.gmra.mxu0 %vm299_vm2, %v895_v9  ;;  %1459 = vmatmul.msk.bf16.vlgmr.msra.gmra.mxu3 %vm299_vm2, %v992_v10  ;;  %v1028_v13 = vpack.c.b16 %v1027_v12, %v887_v62 }
 0x211   :  { %v1029_v14 = vrot.slane %v1028_v13, 2 }
 0x21f   :  { %1472 = vmatmul.msk.bf16.vlgmr.msrb.gmra.mxu0 %vm299_vm2, %v1029_v14 }
 0x282   :  { %v948_v21 = vpop.f32.mrf.mxu1 }
 0x28a   :  { %v950_v28 = vpop.f32.mrf.mxu1 }
 0x28c   :  { %v920_v29 = vpop.f32.mrf.mxu0 }
 0x28d   :  { %v949_v34 = vadd.f32 %v948_v21, %v920_v29 }
 0x28e   :  { %v981_v31 = vpop.f32.mrf.mxu2 }
 0x28f   :  { %v985_v36 = vadd.f32 %v981_v31, %v949_v34 }
 0x292   :  { %v1017_v32 = vpop.f32.mrf.mxu3 }
 0x293   :  { %v1021_v38 = vadd.f32 %v1017_v32, %v985_v36 }
 0x294   :  { %v922_v33 = vpop.f32.mrf.mxu0 }
 0x296   :  { %v983_v35 = vpop.f32.mrf.mxu2 }
 0x29a   :  { %v1019_v37 = vpop.f32.mrf.mxu3 }
 0x29c   :  { %v1054_v40 = vpop.f32.mrf.mxu0 }
 0x29d   :  { %v1058_v41 = vadd.f32 %v1054_v40, %v1021_v38 }
 0x29f   :  { %v1063_v43 = vmul.f32 %v1594_v39, %v1058_v41 }
 0x2a1   :  { %v1068_v44 = vadd.f32 %v1595_v42, %v1063_v43 }
 0x2a3   :  { %v1069_v45 = vmax.f32 %v1068_v44, 0.0 }
 0x2a4   :  { %v1056_v46 = vpop.f32.mrf.mxu0 }
 0x2a5   :  { %v1070_v47 = vpack.c.bf16 %v1069_v45, %v1069_v45 }
 0x2a7   :  { %v1088_v48 = vunpack.c.l.b16 %v1070_v47  ;;  %1514 = vmatmul.msk.bf16.vlgmr.msrb.gmra.mxu2 %vm517_vm3, %v1070_v47 }
 0x2a9   :  { %v1089_v49 = vpack.c.b16 %v1088_v48, %v1088_v48 }
 0x2ab   :  { %v1093_v50 = vshll.u32 %v1089_v49, 16  ;;  %v1185_v51 = vrot.slane %v1089_v49, 1  ;;  %v1091_v52 = vshrl.u32 %v1089_v49, 16 }
 0x2ad   :  { %v1095_v53 = vrot.slane %v1093_v50, 1  ;;  %1539 = vmatmul.msk.bf16.vlgmr.msrb.gmra.mxu3 %vm517_vm3, %v1185_v51 }
 0x2af   :  { %v1096_v54 = vor.u32 %v1095_v53, %v1091_v52 }
 0x2b1   :  { %1497 = vmatmul.msk.bf16.vlgmr.msrb.gmra.mxu1 %vm517_vm3, %v1096_v54 }
 0x32a   :  { %v1173_v55 = vpop.f32.mrf.mxu2 }
 0x32e   :  { %v1133_v56 = vpop.f32.mrf.mxu1 }
 0x32f   :  { %v1174_v57 = vadd.f32 %v1173_v55, %v1133_v56 }
 0x330   :  { %v1222_v59 = vpop.f32.mrf.mxu3 }
 0x331   :  { %v1226_v60 = vadd.f32 %v1222_v59, %v1174_v57 }
 0x332   :  { %v1175_v62 = vpop.f32.mrf.mxu2 }
 0x333   :  { %v1231_v63 = vmul.f32 %v1596_v58, %v1226_v60 }
 0x335   :  { %v1236_v0 = vadd.f32 %v1597_v61, %v1231_v63 }
 0x336   :  { %v1135_v1 = vpop.f32.mrf.mxu1 }
 0x337   :  { %v1237_v2 = vmax.f32 %v1236_v0, 0.0 }
 0x338   :  { %v1224_v3 = vpop.f32.mrf.mxu3 }
 0x339   :  { %v1238_v4 = vsel %vm636_vm4, %v1237_v2, 0.0 }
 0x33a   :  { %v1239_v5 = vrot.slane %v1238_v4, 4 }
 0x33c   :  { %v1240_v6 = vadd.f32 %v1239_v5, %v1238_v4 }
 0x33e   :  { %v1241_v7 = vrot.slane %v1240_v6, 2 }
 0x340   :  { %v1242_v8 = vadd.f32 %v1241_v7, %v1240_v6 }
 0x342   :  { %v1243_v9 = vrot.slane %v1242_v8, 1 }
 0x344   :  { %v1244_v10 = vadd.f32 %v1243_v9, %v1242_v8 }
 0x346   :  { %v1245_v11 = vmul.f32 %v1244_v10, %v1885_v27 }
 0x348   :  { %1540 = vst.msk [vmem:[%s1976_s10 + $0x1] sm:$0x1] %vm652_vm6, %v1245_v11 }

</bundles_post_ra>
